<compile_context>
chip_gen: v7x
topology: tpu7x:2x2x1
jax: 0.10.0
libtpu: 0.0.40
codegen_flags: <defaults>
</compile_context>

<pallas_src>
import math

import jax
import jax.numpy as jnp
from jax.experimental import pallas as pl
from jax.experimental.pallas import tpu as pltpu


# ----------------------------- Pallas kernel -------------------------------

def make_fused_lstm_fc_kernel(num_layers: int, seq_len: int, hidden_size: int):
    """Kernel refs layout: (x, [w_ih, w_hh, b] * num_layers, w_fc, b_fc, out)."""

    def kernel(*refs):
        x_ref = refs[0]
        layer_refs = refs[1:1 + 3 * num_layers]
        wfc_ref = refs[1 + 3 * num_layers]
        bfc_ref = refs[2 + 3 * num_layers]
        out_ref = refs[3 + 3 * num_layers]

        B = x_ref.shape[0]
        H = hidden_size

        # Whole input is tiny -> load once into registers.
        x_all = x_ref[...]                                     # (B, T, D)

        # Load packed weights once; hoist the bias broadcast out of the time loop.
        layers = []
        for l in range(num_layers):
            wih = layer_refs[3 * l][...]                       # (D_in, 4H)
            whh = layer_refs[3 * l + 1][...]                   # (H,    4H)
            b = jnp.broadcast_to(layer_refs[3 * l + 2][...], (B, 4 * H))
            layers.append((wih, whh, b))

        h = [jnp.zeros((B, H), jnp.float32) for _ in range(num_layers)]
        c = [jnp.zeros((B, H), jnp.float32) for _ in range(num_layers)]

        # Statically unrolled time loop: every layer advances one step per t.
        for t in range(seq_len):
            inp = x_all[:, t, :]                               # (B, D_in)
            for l in range(num_layers):
                wih, whh, b = layers[l]
                gates = (jnp.dot(inp, wih, preferred_element_type=jnp.float32)
                         + jnp.dot(h[l], whh, preferred_element_type=jnp.float32)
                         + b)                                  # (B, 4H), gate order i|f|g|o
                i_g = jax.nn.sigmoid(gates[:, 0 * H:1 * H])
                f_g = jax.nn.sigmoid(gates[:, 1 * H:2 * H])
                g_g = jnp.tanh(gates[:, 2 * H:3 * H])
                o_g = jax.nn.sigmoid(gates[:, 3 * H:4 * H])
                c[l] = f_g * c[l] + i_g * g_g
                h[l] = o_g * jnp.tanh(c[l])
                inp = h[l]

        # Fused FC head on the last layer's final hidden state (== out[:, -1, :] @ W^T + b).
        out_ref[...] = (jnp.dot(h[-1], wfc_ref[...],
                                preferred_element_type=jnp.float32)
                        + bfc_ref[...]).astype(out_ref.dtype)

    return kernel


# ------------------------------- wrapper ------------------------------------

@jax.jit
def lstm_model_forward(x_btd, lstm_params, fc_params):
    """x_btd: (B, T, D) batch-first. Returns (B, output_size)."""
    B, T, _ = x_btd.shape
    H = lstm_params[0][1].shape[0]
    O = fc_params[0].shape[1]
    num_layers = len(lstm_params)

    flat = []
    for (wih, whh, b) in lstm_params:
        flat += [wih, whh, b]
    flat += [fc_params[0], fc_params[1]]

    kernel = make_fused_lstm_fc_kernel(num_layers, T, H)
    n_inputs = 1 + len(flat)
    return pl.pallas_call(
        kernel,
        out_shape=jax.ShapeDtypeStruct((B, O), jnp.float32),
        in_specs=[pl.BlockSpec(memory_space=pltpu.MemorySpace.VMEM)] * n_inputs,
        out_specs=pl.BlockSpec(memory_space=pltpu.MemorySpace.VMEM),
    )(x_btd, *flat)


# ------------------------------ params init ---------------------------------

def init_params(key, input_size, hidden_size, output_size, num_layers):
    """PyTorch-style uniform(-1/sqrt(H), 1/sqrt(H)) init; weights packed for the fused kernel."""
    k = 1.0 / math.sqrt(hidden_size)
    lstm = []
    for layer in range(num_layers):
        d_in = input_size if layer == 0 else hidden_size
        key, k1, k2, k3, k4 = jax.random.split(key, 5)
        w_ih = jax.random.uniform(k1, (4 * hidden_size, d_in), jnp.float32, -k, k)
        w_hh = jax.random.uniform(k2, (4 * hidden_size, hidden_size), jnp.float32, -k, k)
        b_ih = jax.random.uniform(k3, (4 * hidden_size,), jnp.float32, -k, k)
        b_hh = jax.random.uniform(k4, (4 * hidden_size,), jnp.float32, -k, k)
        # Packed: columns are [i | f | g | o] blocks of width H.
        lstm.append((w_ih.T, w_hh.T, (b_ih + b_hh).reshape(1, 4 * hidden_size)))
    key, k5, k6 = jax.random.split(key, 3)
    w_fc = jax.random.uniform(k5, (output_size, hidden_size), jnp.float32, -k, k)
    b_fc = jax.random.uniform(k6, (output_size,), jnp.float32, -k, k)
    return lstm, (w_fc.T, b_fc.reshape(1, output_size))


# --------------------------- pure-JAX reference ------------------------------

def reference_forward(x_btd, lstm_params, fc_params):
    x = jnp.transpose(x_btd, (1, 0, 2))                        # (T, B, D)
    B = x.shape[1]
    for (wih, whh, b) in lstm_params:
        H = whh.shape[0]

        def step(carry, x_t, wih=wih, whh=whh, b=b, H=H):
            h, c = carry
            g = x_t @ wih + h @ whh + b
            i = jax.nn.sigmoid(g[:, :H])
            f = jax.nn.sigmoid(g[:, H:2 * H])
            gg = jnp.tanh(g[:, 2 * H:3 * H])
            o = jax.nn.sigmoid(g[:, 3 * H:])
            c = f * c + i * gg
            h = o * jnp.tanh(c)
            return (h, c), h

        init = (jnp.zeros((B, H), jnp.float32), jnp.zeros((B, H), jnp.float32))
        _, x = jax.lax.scan(step, init, x)
    w_fc, b_fc = fc_params
    return x[-1] @ w_fc + b_fc


# ----------------------------------- main ------------------------------------

if __name__ == "__main__":
    input_size, hidden_size, output_size = 16, 32, 8
    num_layers, seq_len, batch = 2, 8, 2

    key = jax.random.PRNGKey(0)
    key, kx = jax.random.split(key)
    x = jax.random.normal(kx, (batch, seq_len, input_size), jnp.float32)

    lstm_params, fc_params = init_params(key, input_size, hidden_size,
                                         output_size, num_layers)

    out = lstm_model_forward(x, lstm_params, fc_params)
    out = jax.block_until_ready(out)

    ref = reference_forward(x, lstm_params, fc_params)
    assert out.shape == (batch, output_size)
    assert jnp.allclose(out, ref, atol=5e-3, rtol=5e-3), "mismatch vs reference"

    print("KERNEL_OK")
</pallas_src>

<mosaic_0001>
module attributes {stable_mosaic.version = 11 : i64} {
  func.func @kernel(%arg0: memref<2x8x16xf32, #tpu.memory_space<vmem>>, %arg1: memref<16x128xf32, #tpu.memory_space<vmem>>, %arg2: memref<32x128xf32, #tpu.memory_space<vmem>>, %arg3: memref<1x128xf32, #tpu.memory_space<vmem>>, %arg4: memref<32x128xf32, #tpu.memory_space<vmem>>, %arg5: memref<32x128xf32, #tpu.memory_space<vmem>>, %arg6: memref<1x128xf32, #tpu.memory_space<vmem>>, %arg7: memref<32x8xf32, #tpu.memory_space<vmem>>, %arg8: memref<1x8xf32, #tpu.memory_space<vmem>>, %arg9: memref<2x8xf32, #tpu.memory_space<vmem>>) attributes {dimension_semantics = [], scalar_prefetch = 0 : i64, scratch_operands = 0 : i64, tpu.core_type = #tpu.core_type<tc>} {
    %c0 = arith.constant 0 : index
    %c0_0 = arith.constant 0 : index
    %c0_1 = arith.constant 0 : index
    %0 = vector.load %arg0[%c0, %c0_0, %c0_1] : memref<2x8x16xf32, #tpu.memory_space<vmem>>, vector<2x8x16xf32>
    %c0_2 = arith.constant 0 : index
    %c0_3 = arith.constant 0 : index
    %1 = vector.load %arg1[%c0_2, %c0_3] : memref<16x128xf32, #tpu.memory_space<vmem>>, vector<16x128xf32>
    %c0_4 = arith.constant 0 : index
    %c0_5 = arith.constant 0 : index
    %2 = vector.load %arg2[%c0_4, %c0_5] : memref<32x128xf32, #tpu.memory_space<vmem>>, vector<32x128xf32>
    %c0_6 = arith.constant 0 : index
    %c0_7 = arith.constant 0 : index
    %3 = vector.load %arg3[%c0_6, %c0_7] : memref<1x128xf32, #tpu.memory_space<vmem>>, vector<1x128xf32>
    %4 = vector.shape_cast %3 : vector<1x128xf32> to vector<1x128xf32>
    %5 = vector.broadcast %4 : vector<1x128xf32> to vector<2x128xf32>
    %c0_8 = arith.constant 0 : index
    %c0_9 = arith.constant 0 : index
    %6 = vector.load %arg4[%c0_8, %c0_9] : memref<32x128xf32, #tpu.memory_space<vmem>>, vector<32x128xf32>
    %c0_10 = arith.constant 0 : index
    %c0_11 = arith.constant 0 : index
    %7 = vector.load %arg5[%c0_10, %c0_11] : memref<32x128xf32, #tpu.memory_space<vmem>>, vector<32x128xf32>
    %c0_12 = arith.constant 0 : index
    %c0_13 = arith.constant 0 : index
    %8 = vector.load %arg6[%c0_12, %c0_13] : memref<1x128xf32, #tpu.memory_space<vmem>>, vector<1x128xf32>
    %9 = vector.shape_cast %8 : vector<1x128xf32> to vector<1x128xf32>
    %10 = vector.broadcast %9 : vector<1x128xf32> to vector<2x128xf32>
    %cst = arith.constant 0.000000e+00 : f32
    %11 = vector.broadcast %cst : f32 to vector<2x32xf32>
    %cst_14 = arith.constant 0.000000e+00 : f32
    %12 = vector.broadcast %cst_14 : f32 to vector<2x32xf32>
    %cst_15 = arith.constant 0.000000e+00 : f32
    %13 = vector.broadcast %cst_15 : f32 to vector<2x32xf32>
    %cst_16 = arith.constant 0.000000e+00 : f32
    %14 = vector.broadcast %cst_16 : f32 to vector<2x32xf32>
    %15 = vector.extract_strided_slice %0 {offsets = [0, 0, 0], sizes = [2, 1, 16], strides = [1, 1, 1]} : vector<2x8x16xf32> to vector<2x1x16xf32>
    %16 = vector.shape_cast %15 : vector<2x1x16xf32> to vector<2x16xf32>
    %cst_17 = arith.constant dense<0.000000e+00> : vector<2x128xf32>
    %17 = tpu.matmul %16, %1, %cst_17 {dimension_numbers = #tpu.dot_dimension_numbers<[1], [0], [0], [1], [0, 0, 1, 1], [], []>} : vector<2x16xf32>, vector<16x128xf32>, vector<2x128xf32> -> vector<2x128xf32>
    %cst_18 = arith.constant dense<0.000000e+00> : vector<2x128xf32>
    %18 = tpu.matmul %11, %2, %cst_18 {dimension_numbers = #tpu.dot_dimension_numbers<[1], [0], [0], [1], [0, 0, 1, 1], [], []>} : vector<2x32xf32>, vector<32x128xf32>, vector<2x128xf32> -> vector<2x128xf32>
    %19 = arith.addf %17, %18 : vector<2x128xf32>
    %20 = arith.addf %19, %5 : vector<2x128xf32>
    %21 = vector.extract_strided_slice %20 {offsets = [0, 0], sizes = [2, 32], strides = [1, 1]} : vector<2x128xf32> to vector<2x32xf32>
    %22 = arith.negf %21 : vector<2x32xf32>
    %23 = math.exp %22 : vector<2x32xf32>
    %cst_19 = arith.constant 1.000000e+00 : f32
    %24 = vector.broadcast %cst_19 : f32 to vector<2x32xf32>
    %25 = arith.addf %24, %23 : vector<2x32xf32>
    %26 = arith.divf %24, %25 : vector<2x32xf32>
    %27 = vector.extract_strided_slice %20 {offsets = [0, 32], sizes = [2, 32], strides = [1, 1]} : vector<2x128xf32> to vector<2x32xf32>
    %28 = arith.negf %27 : vector<2x32xf32>
    %29 = math.exp %28 : vector<2x32xf32>
    %cst_20 = arith.constant 1.000000e+00 : f32
    %30 = vector.broadcast %cst_20 : f32 to vector<2x32xf32>
    %31 = arith.addf %30, %29 : vector<2x32xf32>
    %32 = arith.divf %30, %31 : vector<2x32xf32>
    %33 = vector.extract_strided_slice %20 {offsets = [0, 64], sizes = [2, 32], strides = [1, 1]} : vector<2x128xf32> to vector<2x32xf32>
    %34 = math.tanh %33 : vector<2x32xf32>
    %35 = vector.extract_strided_slice %20 {offsets = [0, 96], sizes = [2, 32], strides = [1, 1]} : vector<2x128xf32> to vector<2x32xf32>
    %36 = arith.negf %35 : vector<2x32xf32>
    %37 = math.exp %36 : vector<2x32xf32>
    %cst_21 = arith.constant 1.000000e+00 : f32
    %38 = vector.broadcast %cst_21 : f32 to vector<2x32xf32>
    %39 = arith.addf %38, %37 : vector<2x32xf32>
    %40 = arith.divf %38, %39 : vector<2x32xf32>
    %41 = arith.mulf %32, %13 : vector<2x32xf32>
    %42 = arith.mulf %26, %34 : vector<2x32xf32>
    %43 = arith.addf %41, %42 : vector<2x32xf32>
    %44 = math.tanh %43 : vector<2x32xf32>
    %45 = arith.mulf %40, %44 : vector<2x32xf32>
    %cst_22 = arith.constant dense<0.000000e+00> : vector<2x128xf32>
    %46 = tpu.matmul %45, %6, %cst_22 {dimension_numbers = #tpu.dot_dimension_numbers<[1], [0], [0], [1], [0, 0, 1, 1], [], []>} : vector<2x32xf32>, vector<32x128xf32>, vector<2x128xf32> -> vector<2x128xf32>
    %cst_23 = arith.constant dense<0.000000e+00> : vector<2x128xf32>
    %47 = tpu.matmul %12, %7, %cst_23 {dimension_numbers = #tpu.dot_dimension_numbers<[1], [0], [0], [1], [0, 0, 1, 1], [], []>} : vector<2x32xf32>, vector<32x128xf32>, vector<2x128xf32> -> vector<2x128xf32>
    %48 = arith.addf %46, %47 : vector<2x128xf32>
    %49 = arith.addf %48, %10 : vector<2x128xf32>
    %50 = vector.extract_strided_slice %49 {offsets = [0, 0], sizes = [2, 32], strides = [1, 1]} : vector<2x128xf32> to vector<2x32xf32>
    %51 = arith.negf %50 : vector<2x32xf32>
    %52 = math.exp %51 : vector<2x32xf32>
    %cst_24 = arith.constant 1.000000e+00 : f32
    %53 = vector.broadcast %cst_24 : f32 to vector<2x32xf32>
    %54 = arith.addf %53, %52 : vector<2x32xf32>
    %55 = arith.divf %53, %54 : vector<2x32xf32>
    %56 = vector.extract_strided_slice %49 {offsets = [0, 32], sizes = [2, 32], strides = [1, 1]} : vector<2x128xf32> to vector<2x32xf32>
    %57 = arith.negf %56 : vector<2x32xf32>
    %58 = math.exp %57 : vector<2x32xf32>
    %cst_25 = arith.constant 1.000000e+00 : f32
    %59 = vector.broadcast %cst_25 : f32 to vector<2x32xf32>
    %60 = arith.addf %59, %58 : vector<2x32xf32>
    %61 = arith.divf %59, %60 : vector<2x32xf32>
    %62 = vector.extract_strided_slice %49 {offsets = [0, 64], sizes = [2, 32], strides = [1, 1]} : vector<2x128xf32> to vector<2x32xf32>
    %63 = math.tanh %62 : vector<2x32xf32>
    %64 = vector.extract_strided_slice %49 {offsets = [0, 96], sizes = [2, 32], strides = [1, 1]} : vector<2x128xf32> to vector<2x32xf32>
    %65 = arith.negf %64 : vector<2x32xf32>
    %66 = math.exp %65 : vector<2x32xf32>
    %cst_26 = arith.constant 1.000000e+00 : f32
    %67 = vector.broadcast %cst_26 : f32 to vector<2x32xf32>
    %68 = arith.addf %67, %66 : vector<2x32xf32>
    %69 = arith.divf %67, %68 : vector<2x32xf32>
    %70 = arith.mulf %61, %14 : vector<2x32xf32>
    %71 = arith.mulf %55, %63 : vector<2x32xf32>
    %72 = arith.addf %70, %71 : vector<2x32xf32>
    %73 = math.tanh %72 : vector<2x32xf32>
    %74 = arith.mulf %69, %73 : vector<2x32xf32>
    %75 = vector.extract_strided_slice %0 {offsets = [0, 1, 0], sizes = [2, 1, 16], strides = [1, 1, 1]} : vector<2x8x16xf32> to vector<2x1x16xf32>
    %76 = vector.shape_cast %75 : vector<2x1x16xf32> to vector<2x16xf32>
    %cst_27 = arith.constant dense<0.000000e+00> : vector<2x128xf32>
    %77 = tpu.matmul %76, %1, %cst_27 {dimension_numbers = #tpu.dot_dimension_numbers<[1], [0], [0], [1], [0, 0, 1, 1], [], []>} : vector<2x16xf32>, vector<16x128xf32>, vector<2x128xf32> -> vector<2x128xf32>
    %cst_28 = arith.constant dense<0.000000e+00> : vector<2x128xf32>
    %78 = tpu.matmul %45, %2, %cst_28 {dimension_numbers = #tpu.dot_dimension_numbers<[1], [0], [0], [1], [0, 0, 1, 1], [], []>} : vector<2x32xf32>, vector<32x128xf32>, vector<2x128xf32> -> vector<2x128xf32>
    %79 = arith.addf %77, %78 : vector<2x128xf32>
    %80 = arith.addf %79, %5 : vector<2x128xf32>
    %81 = vector.extract_strided_slice %80 {offsets = [0, 0], sizes = [2, 32], strides = [1, 1]} : vector<2x128xf32> to vector<2x32xf32>
    %82 = arith.negf %81 : vector<2x32xf32>
    %83 = math.exp %82 : vector<2x32xf32>
    %cst_29 = arith.constant 1.000000e+00 : f32
    %84 = vector.broadcast %cst_29 : f32 to vector<2x32xf32>
    %85 = arith.addf %84, %83 : vector<2x32xf32>
    %86 = arith.divf %84, %85 : vector<2x32xf32>
    %87 = vector.extract_strided_slice %80 {offsets = [0, 32], sizes = [2, 32], strides = [1, 1]} : vector<2x128xf32> to vector<2x32xf32>
    %88 = arith.negf %87 : vector<2x32xf32>
    %89 = math.exp %88 : vector<2x32xf32>
    %cst_30 = arith.constant 1.000000e+00 : f32
    %90 = vector.broadcast %cst_30 : f32 to vector<2x32xf32>
    %91 = arith.addf %90, %89 : vector<2x32xf32>
    %92 = arith.divf %90, %91 : vector<2x32xf32>
    %93 = vector.extract_strided_slice %80 {offsets = [0, 64], sizes = [2, 32], strides = [1, 1]} : vector<2x128xf32> to vector<2x32xf32>
    %94 = math.tanh %93 : vector<2x32xf32>
    %95 = vector.extract_strided_slice %80 {offsets = [0, 96], sizes = [2, 32], strides = [1, 1]} : vector<2x128xf32> to vector<2x32xf32>
    %96 = arith.negf %95 : vector<2x32xf32>
    %97 = math.exp %96 : vector<2x32xf32>
    %cst_31 = arith.constant 1.000000e+00 : f32
    %98 = vector.broadcast %cst_31 : f32 to vector<2x32xf32>
    %99 = arith.addf %98, %97 : vector<2x32xf32>
    %100 = arith.divf %98, %99 : vector<2x32xf32>
    %101 = arith.mulf %92, %43 : vector<2x32xf32>
    %102 = arith.mulf %86, %94 : vector<2x32xf32>
    %103 = arith.addf %101, %102 : vector<2x32xf32>
    %104 = math.tanh %103 : vector<2x32xf32>
    %105 = arith.mulf %100, %104 : vector<2x32xf32>
    %cst_32 = arith.constant dense<0.000000e+00> : vector<2x128xf32>
    %106 = tpu.matmul %105, %6, %cst_32 {dimension_numbers = #tpu.dot_dimension_numbers<[1], [0], [0], [1], [0, 0, 1, 1], [], []>} : vector<2x32xf32>, vector<32x128xf32>, vector<2x128xf32> -> vector<2x128xf32>
    %cst_33 = arith.constant dense<0.000000e+00> : vector<2x128xf32>
    %107 = tpu.matmul %74, %7, %cst_33 {dimension_numbers = #tpu.dot_dimension_numbers<[1], [0], [0], [1], [0, 0, 1, 1], [], []>} : vector<2x32xf32>, vector<32x128xf32>, vector<2x128xf32> -> vector<2x128xf32>
    %108 = arith.addf %106, %107 : vector<2x128xf32>
    %109 = arith.addf %108, %10 : vector<2x128xf32>
    %110 = vector.extract_strided_slice %109 {offsets = [0, 0], sizes = [2, 32], strides = [1, 1]} : vector<2x128xf32> to vector<2x32xf32>
    %111 = arith.negf %110 : vector<2x32xf32>
    %112 = math.exp %111 : vector<2x32xf32>
    %cst_34 = arith.constant 1.000000e+00 : f32
    %113 = vector.broadcast %cst_34 : f32 to vector<2x32xf32>
    %114 = arith.addf %113, %112 : vector<2x32xf32>
    %115 = arith.divf %113, %114 : vector<2x32xf32>
    %116 = vector.extract_strided_slice %109 {offsets = [0, 32], sizes = [2, 32], strides = [1, 1]} : vector<2x128xf32> to vector<2x32xf32>
    %117 = arith.negf %116 : vector<2x32xf32>
    %118 = math.exp %117 : vector<2x32xf32>
    %cst_35 = arith.constant 1.000000e+00 : f32
    %119 = vector.broadcast %cst_35 : f32 to vector<2x32xf32>
    %120 = arith.addf %119, %118 : vector<2x32xf32>
    %121 = arith.divf %119, %120 : vector<2x32xf32>
    %122 = vector.extract_strided_slice %109 {offsets = [0, 64], sizes = [2, 32], strides = [1, 1]} : vector<2x128xf32> to vector<2x32xf32>
    %123 = math.tanh %122 : vector<2x32xf32>
    %124 = vector.extract_strided_slice %109 {offsets = [0, 96], sizes = [2, 32], strides = [1, 1]} : vector<2x128xf32> to vector<2x32xf32>
    %125 = arith.negf %124 : vector<2x32xf32>
    %126 = math.exp %125 : vector<2x32xf32>
    %cst_36 = arith.constant 1.000000e+00 : f32
    %127 = vector.broadcast %cst_36 : f32 to vector<2x32xf32>
    %128 = arith.addf %127, %126 : vector<2x32xf32>
    %129 = arith.divf %127, %128 : vector<2x32xf32>
    %130 = arith.mulf %121, %72 : vector<2x32xf32>
    %131 = arith.mulf %115, %123 : vector<2x32xf32>
    %132 = arith.addf %130, %131 : vector<2x32xf32>
    %133 = math.tanh %132 : vector<2x32xf32>
    %134 = arith.mulf %129, %133 : vector<2x32xf32>
    %135 = vector.extract_strided_slice %0 {offsets = [0, 2, 0], sizes = [2, 1, 16], strides = [1, 1, 1]} : vector<2x8x16xf32> to vector<2x1x16xf32>
    %136 = vector.shape_cast %135 : vector<2x1x16xf32> to vector<2x16xf32>
    %cst_37 = arith.constant dense<0.000000e+00> : vector<2x128xf32>
    %137 = tpu.matmul %136, %1, %cst_37 {dimension_numbers = #tpu.dot_dimension_numbers<[1], [0], [0], [1], [0, 0, 1, 1], [], []>} : vector<2x16xf32>, vector<16x128xf32>, vector<2x128xf32> -> vector<2x128xf32>
    %cst_38 = arith.constant dense<0.000000e+00> : vector<2x128xf32>
    %138 = tpu.matmul %105, %2, %cst_38 {dimension_numbers = #tpu.dot_dimension_numbers<[1], [0], [0], [1], [0, 0, 1, 1], [], []>} : vector<2x32xf32>, vector<32x128xf32>, vector<2x128xf32> -> vector<2x128xf32>
    %139 = arith.addf %137, %138 : vector<2x128xf32>
    %140 = arith.addf %139, %5 : vector<2x128xf32>
    %141 = vector.extract_strided_slice %140 {offsets = [0, 0], sizes = [2, 32], strides = [1, 1]} : vector<2x128xf32> to vector<2x32xf32>
    %142 = arith.negf %141 : vector<2x32xf32>
    %143 = math.exp %142 : vector<2x32xf32>
    %cst_39 = arith.constant 1.000000e+00 : f32
    %144 = vector.broadcast %cst_39 : f32 to vector<2x32xf32>
    %145 = arith.addf %144, %143 : vector<2x32xf32>
    %146 = arith.divf %144, %145 : vector<2x32xf32>
    %147 = vector.extract_strided_slice %140 {offsets = [0, 32], sizes = [2, 32], strides = [1, 1]} : vector<2x128xf32> to vector<2x32xf32>
    %148 = arith.negf %147 : vector<2x32xf32>
    %149 = math.exp %148 : vector<2x32xf32>
    %cst_40 = arith.constant 1.000000e+00 : f32
    %150 = vector.broadcast %cst_40 : f32 to vector<2x32xf32>
    %151 = arith.addf %150, %149 : vector<2x32xf32>
    %152 = arith.divf %150, %151 : vector<2x32xf32>
    %153 = vector.extract_strided_slice %140 {offsets = [0, 64], sizes = [2, 32], strides = [1, 1]} : vector<2x128xf32> to vector<2x32xf32>
    %154 = math.tanh %153 : vector<2x32xf32>
    %155 = vector.extract_strided_slice %140 {offsets = [0, 96], sizes = [2, 32], strides = [1, 1]} : vector<2x128xf32> to vector<2x32xf32>
    %156 = arith.negf %155 : vector<2x32xf32>
    %157 = math.exp %156 : vector<2x32xf32>
    %cst_41 = arith.constant 1.000000e+00 : f32
    %158 = vector.broadcast %cst_41 : f32 to vector<2x32xf32>
    %159 = arith.addf %158, %157 : vector<2x32xf32>
    %160 = arith.divf %158, %159 : vector<2x32xf32>
    %161 = arith.mulf %152, %103 : vector<2x32xf32>
    %162 = arith.mulf %146, %154 : vector<2x32xf32>
    %163 = arith.addf %161, %162 : vector<2x32xf32>
    %164 = math.tanh %163 : vector<2x32xf32>
    %165 = arith.mulf %160, %164 : vector<2x32xf32>
    %cst_42 = arith.constant dense<0.000000e+00> : vector<2x128xf32>
    %166 = tpu.matmul %165, %6, %cst_42 {dimension_numbers = #tpu.dot_dimension_numbers<[1], [0], [0], [1], [0, 0, 1, 1], [], []>} : vector<2x32xf32>, vector<32x128xf32>, vector<2x128xf32> -> vector<2x128xf32>
    %cst_43 = arith.constant dense<0.000000e+00> : vector<2x128xf32>
    %167 = tpu.matmul %134, %7, %cst_43 {dimension_numbers = #tpu.dot_dimension_numbers<[1], [0], [0], [1], [0, 0, 1, 1], [], []>} : vector<2x32xf32>, vector<32x128xf32>, vector<2x128xf32> -> vector<2x128xf32>
    %168 = arith.addf %166, %167 : vector<2x128xf32>
    %169 = arith.addf %168, %10 : vector<2x128xf32>
    %170 = vector.extract_strided_slice %169 {offsets = [0, 0], sizes = [2, 32], strides = [1, 1]} : vector<2x128xf32> to vector<2x32xf32>
    %171 = arith.negf %170 : vector<2x32xf32>
    %172 = math.exp %171 : vector<2x32xf32>
    %cst_44 = arith.constant 1.000000e+00 : f32
    %173 = vector.broadcast %cst_44 : f32 to vector<2x32xf32>
    %174 = arith.addf %173, %172 : vector<2x32xf32>
    %175 = arith.divf %173, %174 : vector<2x32xf32>
    %176 = vector.extract_strided_slice %169 {offsets = [0, 32], sizes = [2, 32], strides = [1, 1]} : vector<2x128xf32> to vector<2x32xf32>
    %177 = arith.negf %176 : vector<2x32xf32>
    %178 = math.exp %177 : vector<2x32xf32>
    %cst_45 = arith.constant 1.000000e+00 : f32
    %179 = vector.broadcast %cst_45 : f32 to vector<2x32xf32>
    %180 = arith.addf %179, %178 : vector<2x32xf32>
    %181 = arith.divf %179, %180 : vector<2x32xf32>
    %182 = vector.extract_strided_slice %169 {offsets = [0, 64], sizes = [2, 32], strides = [1, 1]} : vector<2x128xf32> to vector<2x32xf32>
    %183 = math.tanh %182 : vector<2x32xf32>
    %184 = vector.extract_strided_slice %169 {offsets = [0, 96], sizes = [2, 32], strides = [1, 1]} : vector<2x128xf32> to vector<2x32xf32>
    %185 = arith.negf %184 : vector<2x32xf32>
    %186 = math.exp %185 : vector<2x32xf32>
    %cst_46 = arith.constant 1.000000e+00 : f32
    %187 = vector.broadcast %cst_46 : f32 to vector<2x32xf32>
    %188 = arith.addf %187, %186 : vector<2x32xf32>
    %189 = arith.divf %187, %188 : vector<2x32xf32>
    %190 = arith.mulf %181, %132 : vector<2x32xf32>
    %191 = arith.mulf %175, %183 : vector<2x32xf32>
    %192 = arith.addf %190, %191 : vector<2x32xf32>
    %193 = math.tanh %192 : vector<2x32xf32>
    %194 = arith.mulf %189, %193 : vector<2x32xf32>
    %195 = vector.extract_strided_slice %0 {offsets = [0, 3, 0], sizes = [2, 1, 16], strides = [1, 1, 1]} : vector<2x8x16xf32> to vector<2x1x16xf32>
    %196 = vector.shape_cast %195 : vector<2x1x16xf32> to vector<2x16xf32>
    %cst_47 = arith.constant dense<0.000000e+00> : vector<2x128xf32>
    %197 = tpu.matmul %196, %1, %cst_47 {dimension_numbers = #tpu.dot_dimension_numbers<[1], [0], [0], [1], [0, 0, 1, 1], [], []>} : vector<2x16xf32>, vector<16x128xf32>, vector<2x128xf32> -> vector<2x128xf32>
    %cst_48 = arith.constant dense<0.000000e+00> : vector<2x128xf32>
    %198 = tpu.matmul %165, %2, %cst_48 {dimension_numbers = #tpu.dot_dimension_numbers<[1], [0], [0], [1], [0, 0, 1, 1], [], []>} : vector<2x32xf32>, vector<32x128xf32>, vector<2x128xf32> -> vector<2x128xf32>
    %199 = arith.addf %197, %198 : vector<2x128xf32>
    %200 = arith.addf %199, %5 : vector<2x128xf32>
    %201 = vector.extract_strided_slice %200 {offsets = [0, 0], sizes = [2, 32], strides = [1, 1]} : vector<2x128xf32> to vector<2x32xf32>
    %202 = arith.negf %201 : vector<2x32xf32>
    %203 = math.exp %202 : vector<2x32xf32>
    %cst_49 = arith.constant 1.000000e+00 : f32
    %204 = vector.broadcast %cst_49 : f32 to vector<2x32xf32>
    %205 = arith.addf %204, %203 : vector<2x32xf32>
    %206 = arith.divf %204, %205 : vector<2x32xf32>
    %207 = vector.extract_strided_slice %200 {offsets = [0, 32], sizes = [2, 32], strides = [1, 1]} : vector<2x128xf32> to vector<2x32xf32>
    %208 = arith.negf %207 : vector<2x32xf32>
    %209 = math.exp %208 : vector<2x32xf32>
    %cst_50 = arith.constant 1.000000e+00 : f32
    %210 = vector.broadcast %cst_50 : f32 to vector<2x32xf32>
    %211 = arith.addf %210, %209 : vector<2x32xf32>
    %212 = arith.divf %210, %211 : vector<2x32xf32>
    %213 = vector.extract_strided_slice %200 {offsets = [0, 64], sizes = [2, 32], strides = [1, 1]} : vector<2x128xf32> to vector<2x32xf32>
    %214 = math.tanh %213 : vector<2x32xf32>
    %215 = vector.extract_strided_slice %200 {offsets = [0, 96], sizes = [2, 32], strides = [1, 1]} : vector<2x128xf32> to vector<2x32xf32>
    %216 = arith.negf %215 : vector<2x32xf32>
    %217 = math.exp %216 : vector<2x32xf32>
    %cst_51 = arith.constant 1.000000e+00 : f32
    %218 = vector.broadcast %cst_51 : f32 to vector<2x32xf32>
    %219 = arith.addf %218, %217 : vector<2x32xf32>
    %220 = arith.divf %218, %219 : vector<2x32xf32>
    %221 = arith.mulf %212, %163 : vector<2x32xf32>
    %222 = arith.mulf %206, %214 : vector<2x32xf32>
    %223 = arith.addf %221, %222 : vector<2x32xf32>
    %224 = math.tanh %223 : vector<2x32xf32>
    %225 = arith.mulf %220, %224 : vector<2x32xf32>
    %cst_52 = arith.constant dense<0.000000e+00> : vector<2x128xf32>
    %226 = tpu.matmul %225, %6, %cst_52 {dimension_numbers = #tpu.dot_dimension_numbers<[1], [0], [0], [1], [0, 0, 1, 1], [], []>} : vector<2x32xf32>, vector<32x128xf32>, vector<2x128xf32> -> vector<2x128xf32>
    %cst_53 = arith.constant dense<0.000000e+00> : vector<2x128xf32>
    %227 = tpu.matmul %194, %7, %cst_53 {dimension_numbers = #tpu.dot_dimension_numbers<[1], [0], [0], [1], [0, 0, 1, 1], [], []>} : vector<2x32xf32>, vector<32x128xf32>, vector<2x128xf32> -> vector<2x128xf32>
    %228 = arith.addf %226, %227 : vector<2x128xf32>
    %229 = arith.addf %228, %10 : vector<2x128xf32>
    %230 = vector.extract_strided_slice %229 {offsets = [0, 0], sizes = [2, 32], strides = [1, 1]} : vector<2x128xf32> to vector<2x32xf32>
    %231 = arith.negf %230 : vector<2x32xf32>
    %232 = math.exp %231 : vector<2x32xf32>
    %cst_54 = arith.constant 1.000000e+00 : f32
    %233 = vector.broadcast %cst_54 : f32 to vector<2x32xf32>
    %234 = arith.addf %233, %232 : vector<2x32xf32>
    %235 = arith.divf %233, %234 : vector<2x32xf32>
    %236 = vector.extract_strided_slice %229 {offsets = [0, 32], sizes = [2, 32], strides = [1, 1]} : vector<2x128xf32> to vector<2x32xf32>
    %237 = arith.negf %236 : vector<2x32xf32>
    %238 = math.exp %237 : vector<2x32xf32>
    %cst_55 = arith.constant 1.000000e+00 : f32
    %239 = vector.broadcast %cst_55 : f32 to vector<2x32xf32>
    %240 = arith.addf %239, %238 : vector<2x32xf32>
    %241 = arith.divf %239, %240 : vector<2x32xf32>
    %242 = vector.extract_strided_slice %229 {offsets = [0, 64], sizes = [2, 32], strides = [1, 1]} : vector<2x128xf32> to vector<2x32xf32>
    %243 = math.tanh %242 : vector<2x32xf32>
    %244 = vector.extract_strided_slice %229 {offsets = [0, 96], sizes = [2, 32], strides = [1, 1]} : vector<2x128xf32> to vector<2x32xf32>
    %245 = arith.negf %244 : vector<2x32xf32>
    %246 = math.exp %245 : vector<2x32xf32>
    %cst_56 = arith.constant 1.000000e+00 : f32
    %247 = vector.broadcast %cst_56 : f32 to vector<2x32xf32>
    %248 = arith.addf %247, %246 : vector<2x32xf32>
    %249 = arith.divf %247, %248 : vector<2x32xf32>
    %250 = arith.mulf %241, %192 : vector<2x32xf32>
    %251 = arith.mulf %235, %243 : vector<2x32xf32>
    %252 = arith.addf %250, %251 : vector<2x32xf32>
    %253 = math.tanh %252 : vector<2x32xf32>
    %254 = arith.mulf %249, %253 : vector<2x32xf32>
    %255 = vector.extract_strided_slice %0 {offsets = [0, 4, 0], sizes = [2, 1, 16], strides = [1, 1, 1]} : vector<2x8x16xf32> to vector<2x1x16xf32>
    %256 = vector.shape_cast %255 : vector<2x1x16xf32> to vector<2x16xf32>
    %cst_57 = arith.constant dense<0.000000e+00> : vector<2x128xf32>
    %257 = tpu.matmul %256, %1, %cst_57 {dimension_numbers = #tpu.dot_dimension_numbers<[1], [0], [0], [1], [0, 0, 1, 1], [], []>} : vector<2x16xf32>, vector<16x128xf32>, vector<2x128xf32> -> vector<2x128xf32>
    %cst_58 = arith.constant dense<0.000000e+00> : vector<2x128xf32>
    %258 = tpu.matmul %225, %2, %cst_58 {dimension_numbers = #tpu.dot_dimension_numbers<[1], [0], [0], [1], [0, 0, 1, 1], [], []>} : vector<2x32xf32>, vector<32x128xf32>, vector<2x128xf32> -> vector<2x128xf32>
    %259 = arith.addf %257, %258 : vector<2x128xf32>
    %260 = arith.addf %259, %5 : vector<2x128xf32>
    %261 = vector.extract_strided_slice %260 {offsets = [0, 0], sizes = [2, 32], strides = [1, 1]} : vector<2x128xf32> to vector<2x32xf32>
    %262 = arith.negf %261 : vector<2x32xf32>
    %263 = math.exp %262 : vector<2x32xf32>
    %cst_59 = arith.constant 1.000000e+00 : f32
    %264 = vector.broadcast %cst_59 : f32 to vector<2x32xf32>
    %265 = arith.addf %264, %263 : vector<2x32xf32>
    %266 = arith.divf %264, %265 : vector<2x32xf32>
    %267 = vector.extract_strided_slice %260 {offsets = [0, 32], sizes = [2, 32], strides = [1, 1]} : vector<2x128xf32> to vector<2x32xf32>
    %268 = arith.negf %267 : vector<2x32xf32>
    %269 = math.exp %268 : vector<2x32xf32>
    %cst_60 = arith.constant 1.000000e+00 : f32
    %270 = vector.broadcast %cst_60 : f32 to vector<2x32xf32>
    %271 = arith.addf %270, %269 : vector<2x32xf32>
    %272 = arith.divf %270, %271 : vector<2x32xf32>
    %273 = vector.extract_strided_slice %260 {offsets = [0, 64], sizes = [2, 32], strides = [1, 1]} : vector<2x128xf32> to vector<2x32xf32>
    %274 = math.tanh %273 : vector<2x32xf32>
    %275 = vector.extract_strided_slice %260 {offsets = [0, 96], sizes = [2, 32], strides = [1, 1]} : vector<2x128xf32> to vector<2x32xf32>
    %276 = arith.negf %275 : vector<2x32xf32>
    %277 = math.exp %276 : vector<2x32xf32>
    %cst_61 = arith.constant 1.000000e+00 : f32
    %278 = vector.broadcast %cst_61 : f32 to vector<2x32xf32>
    %279 = arith.addf %278, %277 : vector<2x32xf32>
    %280 = arith.divf %278, %279 : vector<2x32xf32>
    %281 = arith.mulf %272, %223 : vector<2x32xf32>
    %282 = arith.mulf %266, %274 : vector<2x32xf32>
    %283 = arith.addf %281, %282 : vector<2x32xf32>
    %284 = math.tanh %283 : vector<2x32xf32>
    %285 = arith.mulf %280, %284 : vector<2x32xf32>
    %cst_62 = arith.constant dense<0.000000e+00> : vector<2x128xf32>
    %286 = tpu.matmul %285, %6, %cst_62 {dimension_numbers = #tpu.dot_dimension_numbers<[1], [0], [0], [1], [0, 0, 1, 1], [], []>} : vector<2x32xf32>, vector<32x128xf32>, vector<2x128xf32> -> vector<2x128xf32>
    %cst_63 = arith.constant dense<0.000000e+00> : vector<2x128xf32>
    %287 = tpu.matmul %254, %7, %cst_63 {dimension_numbers = #tpu.dot_dimension_numbers<[1], [0], [0], [1], [0, 0, 1, 1], [], []>} : vector<2x32xf32>, vector<32x128xf32>, vector<2x128xf32> -> vector<2x128xf32>
    %288 = arith.addf %286, %287 : vector<2x128xf32>
    %289 = arith.addf %288, %10 : vector<2x128xf32>
    %290 = vector.extract_strided_slice %289 {offsets = [0, 0], sizes = [2, 32], strides = [1, 1]} : vector<2x128xf32> to vector<2x32xf32>
    %291 = arith.negf %290 : vector<2x32xf32>
    %292 = math.exp %291 : vector<2x32xf32>
    %cst_64 = arith.constant 1.000000e+00 : f32
    %293 = vector.broadcast %cst_64 : f32 to vector<2x32xf32>
    %294 = arith.addf %293, %292 : vector<2x32xf32>
    %295 = arith.divf %293, %294 : vector<2x32xf32>
    %296 = vector.extract_strided_slice %289 {offsets = [0, 32], sizes = [2, 32], strides = [1, 1]} : vector<2x128xf32> to vector<2x32xf32>
    %297 = arith.negf %296 : vector<2x32xf32>
    %298 = math.exp %297 : vector<2x32xf32>
    %cst_65 = arith.constant 1.000000e+00 : f32
    %299 = vector.broadcast %cst_65 : f32 to vector<2x32xf32>
    %300 = arith.addf %299, %298 : vector<2x32xf32>
    %301 = arith.divf %299, %300 : vector<2x32xf32>
    %302 = vector.extract_strided_slice %289 {offsets = [0, 64], sizes = [2, 32], strides = [1, 1]} : vector<2x128xf32> to vector<2x32xf32>
    %303 = math.tanh %302 : vector<2x32xf32>
    %304 = vector.extract_strided_slice %289 {offsets = [0, 96], sizes = [2, 32], strides = [1, 1]} : vector<2x128xf32> to vector<2x32xf32>
    %305 = arith.negf %304 : vector<2x32xf32>
    %306 = math.exp %305 : vector<2x32xf32>
    %cst_66 = arith.constant 1.000000e+00 : f32
    %307 = vector.broadcast %cst_66 : f32 to vector<2x32xf32>
    %308 = arith.addf %307, %306 : vector<2x32xf32>
    %309 = arith.divf %307, %308 : vector<2x32xf32>
    %310 = arith.mulf %301, %252 : vector<2x32xf32>
    %311 = arith.mulf %295, %303 : vector<2x32xf32>
    %312 = arith.addf %310, %311 : vector<2x32xf32>
    %313 = math.tanh %312 : vector<2x32xf32>
    %314 = arith.mulf %309, %313 : vector<2x32xf32>
    %315 = vector.extract_strided_slice %0 {offsets = [0, 5, 0], sizes = [2, 1, 16], strides = [1, 1, 1]} : vector<2x8x16xf32> to vector<2x1x16xf32>
    %316 = vector.shape_cast %315 : vector<2x1x16xf32> to vector<2x16xf32>
    %cst_67 = arith.constant dense<0.000000e+00> : vector<2x128xf32>
    %317 = tpu.matmul %316, %1, %cst_67 {dimension_numbers = #tpu.dot_dimension_numbers<[1], [0], [0], [1], [0, 0, 1, 1], [], []>} : vector<2x16xf32>, vector<16x128xf32>, vector<2x128xf32> -> vector<2x128xf32>
    %cst_68 = arith.constant dense<0.000000e+00> : vector<2x128xf32>
    %318 = tpu.matmul %285, %2, %cst_68 {dimension_numbers = #tpu.dot_dimension_numbers<[1], [0], [0], [1], [0, 0, 1, 1], [], []>} : vector<2x32xf32>, vector<32x128xf32>, vector<2x128xf32> -> vector<2x128xf32>
    %319 = arith.addf %317, %318 : vector<2x128xf32>
    %320 = arith.addf %319, %5 : vector<2x128xf32>
    %321 = vector.extract_strided_slice %320 {offsets = [0, 0], sizes = [2, 32], strides = [1, 1]} : vector<2x128xf32> to vector<2x32xf32>
    %322 = arith.negf %321 : vector<2x32xf32>
    %323 = math.exp %322 : vector<2x32xf32>
    %cst_69 = arith.constant 1.000000e+00 : f32
    %324 = vector.broadcast %cst_69 : f32 to vector<2x32xf32>
    %325 = arith.addf %324, %323 : vector<2x32xf32>
    %326 = arith.divf %324, %325 : vector<2x32xf32>
    %327 = vector.extract_strided_slice %320 {offsets = [0, 32], sizes = [2, 32], strides = [1, 1]} : vector<2x128xf32> to vector<2x32xf32>
    %328 = arith.negf %327 : vector<2x32xf32>
    %329 = math.exp %328 : vector<2x32xf32>
    %cst_70 = arith.constant 1.000000e+00 : f32
    %330 = vector.broadcast %cst_70 : f32 to vector<2x32xf32>
    %331 = arith.addf %330, %329 : vector<2x32xf32>
    %332 = arith.divf %330, %331 : vector<2x32xf32>
    %333 = vector.extract_strided_slice %320 {offsets = [0, 64], sizes = [2, 32], strides = [1, 1]} : vector<2x128xf32> to vector<2x32xf32>
    %334 = math.tanh %333 : vector<2x32xf32>
    %335 = vector.extract_strided_slice %320 {offsets = [0, 96], sizes = [2, 32], strides = [1, 1]} : vector<2x128xf32> to vector<2x32xf32>
    %336 = arith.negf %335 : vector<2x32xf32>
    %337 = math.exp %336 : vector<2x32xf32>
    %cst_71 = arith.constant 1.000000e+00 : f32
    %338 = vector.broadcast %cst_71 : f32 to vector<2x32xf32>
    %339 = arith.addf %338, %337 : vector<2x32xf32>
    %340 = arith.divf %338, %339 : vector<2x32xf32>
    %341 = arith.mulf %332, %283 : vector<2x32xf32>
    %342 = arith.mulf %326, %334 : vector<2x32xf32>
    %343 = arith.addf %341, %342 : vector<2x32xf32>
    %344 = math.tanh %343 : vector<2x32xf32>
    %345 = arith.mulf %340, %344 : vector<2x32xf32>
    %cst_72 = arith.constant dense<0.000000e+00> : vector<2x128xf32>
    %346 = tpu.matmul %345, %6, %cst_72 {dimension_numbers = #tpu.dot_dimension_numbers<[1], [0], [0], [1], [0, 0, 1, 1], [], []>} : vector<2x32xf32>, vector<32x128xf32>, vector<2x128xf32> -> vector<2x128xf32>
    %cst_73 = arith.constant dense<0.000000e+00> : vector<2x128xf32>
    %347 = tpu.matmul %314, %7, %cst_73 {dimension_numbers = #tpu.dot_dimension_numbers<[1], [0], [0], [1], [0, 0, 1, 1], [], []>} : vector<2x32xf32>, vector<32x128xf32>, vector<2x128xf32> -> vector<2x128xf32>
    %348 = arith.addf %346, %347 : vector<2x128xf32>
    %349 = arith.addf %348, %10 : vector<2x128xf32>
    %350 = vector.extract_strided_slice %349 {offsets = [0, 0], sizes = [2, 32], strides = [1, 1]} : vector<2x128xf32> to vector<2x32xf32>
    %351 = arith.negf %350 : vector<2x32xf32>
    %352 = math.exp %351 : vector<2x32xf32>
    %cst_74 = arith.constant 1.000000e+00 : f32
    %353 = vector.broadcast %cst_74 : f32 to vector<2x32xf32>
    %354 = arith.addf %353, %352 : vector<2x32xf32>
    %355 = arith.divf %353, %354 : vector<2x32xf32>
    %356 = vector.extract_strided_slice %349 {offsets = [0, 32], sizes = [2, 32], strides = [1, 1]} : vector<2x128xf32> to vector<2x32xf32>
    %357 = arith.negf %356 : vector<2x32xf32>
    %358 = math.exp %357 : vector<2x32xf32>
    %cst_75 = arith.constant 1.000000e+00 : f32
    %359 = vector.broadcast %cst_75 : f32 to vector<2x32xf32>
    %360 = arith.addf %359, %358 : vector<2x32xf32>
    %361 = arith.divf %359, %360 : vector<2x32xf32>
    %362 = vector.extract_strided_slice %349 {offsets = [0, 64], sizes = [2, 32], strides = [1, 1]} : vector<2x128xf32> to vector<2x32xf32>
    %363 = math.tanh %362 : vector<2x32xf32>
    %364 = vector.extract_strided_slice %349 {offsets = [0, 96], sizes = [2, 32], strides = [1, 1]} : vector<2x128xf32> to vector<2x32xf32>
    %365 = arith.negf %364 : vector<2x32xf32>
    %366 = math.exp %365 : vector<2x32xf32>
    %cst_76 = arith.constant 1.000000e+00 : f32
    %367 = vector.broadcast %cst_76 : f32 to vector<2x32xf32>
    %368 = arith.addf %367, %366 : vector<2x32xf32>
    %369 = arith.divf %367, %368 : vector<2x32xf32>
    %370 = arith.mulf %361, %312 : vector<2x32xf32>
    %371 = arith.mulf %355, %363 : vector<2x32xf32>
    %372 = arith.addf %370, %371 : vector<2x32xf32>
    %373 = math.tanh %372 : vector<2x32xf32>
    %374 = arith.mulf %369, %373 : vector<2x32xf32>
    %375 = vector.extract_strided_slice %0 {offsets = [0, 6, 0], sizes = [2, 1, 16], strides = [1, 1, 1]} : vector<2x8x16xf32> to vector<2x1x16xf32>
    %376 = vector.shape_cast %375 : vector<2x1x16xf32> to vector<2x16xf32>
    %cst_77 = arith.constant dense<0.000000e+00> : vector<2x128xf32>
    %377 = tpu.matmul %376, %1, %cst_77 {dimension_numbers = #tpu.dot_dimension_numbers<[1], [0], [0], [1], [0, 0, 1, 1], [], []>} : vector<2x16xf32>, vector<16x128xf32>, vector<2x128xf32> -> vector<2x128xf32>
    %cst_78 = arith.constant dense<0.000000e+00> : vector<2x128xf32>
    %378 = tpu.matmul %345, %2, %cst_78 {dimension_numbers = #tpu.dot_dimension_numbers<[1], [0], [0], [1], [0, 0, 1, 1], [], []>} : vector<2x32xf32>, vector<32x128xf32>, vector<2x128xf32> -> vector<2x128xf32>
    %379 = arith.addf %377, %378 : vector<2x128xf32>
    %380 = arith.addf %379, %5 : vector<2x128xf32>
    %381 = vector.extract_strided_slice %380 {offsets = [0, 0], sizes = [2, 32], strides = [1, 1]} : vector<2x128xf32> to vector<2x32xf32>
    %382 = arith.negf %381 : vector<2x32xf32>
    %383 = math.exp %382 : vector<2x32xf32>
    %cst_79 = arith.constant 1.000000e+00 : f32
    %384 = vector.broadcast %cst_79 : f32 to vector<2x32xf32>
    %385 = arith.addf %384, %383 : vector<2x32xf32>
    %386 = arith.divf %384, %385 : vector<2x32xf32>
    %387 = vector.extract_strided_slice %380 {offsets = [0, 32], sizes = [2, 32], strides = [1, 1]} : vector<2x128xf32> to vector<2x32xf32>
    %388 = arith.negf %387 : vector<2x32xf32>
    %389 = math.exp %388 : vector<2x32xf32>
    %cst_80 = arith.constant 1.000000e+00 : f32
    %390 = vector.broadcast %cst_80 : f32 to vector<2x32xf32>
    %391 = arith.addf %390, %389 : vector<2x32xf32>
    %392 = arith.divf %390, %391 : vector<2x32xf32>
    %393 = vector.extract_strided_slice %380 {offsets = [0, 64], sizes = [2, 32], strides = [1, 1]} : vector<2x128xf32> to vector<2x32xf32>
    %394 = math.tanh %393 : vector<2x32xf32>
    %395 = vector.extract_strided_slice %380 {offsets = [0, 96], sizes = [2, 32], strides = [1, 1]} : vector<2x128xf32> to vector<2x32xf32>
    %396 = arith.negf %395 : vector<2x32xf32>
    %397 = math.exp %396 : vector<2x32xf32>
    %cst_81 = arith.constant 1.000000e+00 : f32
    %398 = vector.broadcast %cst_81 : f32 to vector<2x32xf32>
    %399 = arith.addf %398, %397 : vector<2x32xf32>
    %400 = arith.divf %398, %399 : vector<2x32xf32>
    %401 = arith.mulf %392, %343 : vector<2x32xf32>
    %402 = arith.mulf %386, %394 : vector<2x32xf32>
    %403 = arith.addf %401, %402 : vector<2x32xf32>
    %404 = math.tanh %403 : vector<2x32xf32>
    %405 = arith.mulf %400, %404 : vector<2x32xf32>
    %cst_82 = arith.constant dense<0.000000e+00> : vector<2x128xf32>
    %406 = tpu.matmul %405, %6, %cst_82 {dimension_numbers = #tpu.dot_dimension_numbers<[1], [0], [0], [1], [0, 0, 1, 1], [], []>} : vector<2x32xf32>, vector<32x128xf32>, vector<2x128xf32> -> vector<2x128xf32>
    %cst_83 = arith.constant dense<0.000000e+00> : vector<2x128xf32>
    %407 = tpu.matmul %374, %7, %cst_83 {dimension_numbers = #tpu.dot_dimension_numbers<[1], [0], [0], [1], [0, 0, 1, 1], [], []>} : vector<2x32xf32>, vector<32x128xf32>, vector<2x128xf32> -> vector<2x128xf32>
    %408 = arith.addf %406, %407 : vector<2x128xf32>
    %409 = arith.addf %408, %10 : vector<2x128xf32>
    %410 = vector.extract_strided_slice %409 {offsets = [0, 0], sizes = [2, 32], strides = [1, 1]} : vector<2x128xf32> to vector<2x32xf32>
    %411 = arith.negf %410 : vector<2x32xf32>
    %412 = math.exp %411 : vector<2x32xf32>
    %cst_84 = arith.constant 1.000000e+00 : f32
    %413 = vector.broadcast %cst_84 : f32 to vector<2x32xf32>
    %414 = arith.addf %413, %412 : vector<2x32xf32>
    %415 = arith.divf %413, %414 : vector<2x32xf32>
    %416 = vector.extract_strided_slice %409 {offsets = [0, 32], sizes = [2, 32], strides = [1, 1]} : vector<2x128xf32> to vector<2x32xf32>
    %417 = arith.negf %416 : vector<2x32xf32>
    %418 = math.exp %417 : vector<2x32xf32>
    %cst_85 = arith.constant 1.000000e+00 : f32
    %419 = vector.broadcast %cst_85 : f32 to vector<2x32xf32>
    %420 = arith.addf %419, %418 : vector<2x32xf32>
    %421 = arith.divf %419, %420 : vector<2x32xf32>
    %422 = vector.extract_strided_slice %409 {offsets = [0, 64], sizes = [2, 32], strides = [1, 1]} : vector<2x128xf32> to vector<2x32xf32>
    %423 = math.tanh %422 : vector<2x32xf32>
    %424 = vector.extract_strided_slice %409 {offsets = [0, 96], sizes = [2, 32], strides = [1, 1]} : vector<2x128xf32> to vector<2x32xf32>
    %425 = arith.negf %424 : vector<2x32xf32>
    %426 = math.exp %425 : vector<2x32xf32>
    %cst_86 = arith.constant 1.000000e+00 : f32
    %427 = vector.broadcast %cst_86 : f32 to vector<2x32xf32>
    %428 = arith.addf %427, %426 : vector<2x32xf32>
    %429 = arith.divf %427, %428 : vector<2x32xf32>
    %430 = arith.mulf %421, %372 : vector<2x32xf32>
    %431 = arith.mulf %415, %423 : vector<2x32xf32>
    %432 = arith.addf %430, %431 : vector<2x32xf32>
    %433 = math.tanh %432 : vector<2x32xf32>
    %434 = arith.mulf %429, %433 : vector<2x32xf32>
    %435 = vector.extract_strided_slice %0 {offsets = [0, 7, 0], sizes = [2, 1, 16], strides = [1, 1, 1]} : vector<2x8x16xf32> to vector<2x1x16xf32>
    %436 = vector.shape_cast %435 : vector<2x1x16xf32> to vector<2x16xf32>
    %cst_87 = arith.constant dense<0.000000e+00> : vector<2x128xf32>
    %437 = tpu.matmul %436, %1, %cst_87 {dimension_numbers = #tpu.dot_dimension_numbers<[1], [0], [0], [1], [0, 0, 1, 1], [], []>} : vector<2x16xf32>, vector<16x128xf32>, vector<2x128xf32> -> vector<2x128xf32>
    %cst_88 = arith.constant dense<0.000000e+00> : vector<2x128xf32>
    %438 = tpu.matmul %405, %2, %cst_88 {dimension_numbers = #tpu.dot_dimension_numbers<[1], [0], [0], [1], [0, 0, 1, 1], [], []>} : vector<2x32xf32>, vector<32x128xf32>, vector<2x128xf32> -> vector<2x128xf32>
    %439 = arith.addf %437, %438 : vector<2x128xf32>
    %440 = arith.addf %439, %5 : vector<2x128xf32>
    %441 = vector.extract_strided_slice %440 {offsets = [0, 0], sizes = [2, 32], strides = [1, 1]} : vector<2x128xf32> to vector<2x32xf32>
    %442 = arith.negf %441 : vector<2x32xf32>
    %443 = math.exp %442 : vector<2x32xf32>
    %cst_89 = arith.constant 1.000000e+00 : f32
    %444 = vector.broadcast %cst_89 : f32 to vector<2x32xf32>
    %445 = arith.addf %444, %443 : vector<2x32xf32>
    %446 = arith.divf %444, %445 : vector<2x32xf32>
    %447 = vector.extract_strided_slice %440 {offsets = [0, 32], sizes = [2, 32], strides = [1, 1]} : vector<2x128xf32> to vector<2x32xf32>
    %448 = arith.negf %447 : vector<2x32xf32>
    %449 = math.exp %448 : vector<2x32xf32>
    %cst_90 = arith.constant 1.000000e+00 : f32
    %450 = vector.broadcast %cst_90 : f32 to vector<2x32xf32>
    %451 = arith.addf %450, %449 : vector<2x32xf32>
    %452 = arith.divf %450, %451 : vector<2x32xf32>
    %453 = vector.extract_strided_slice %440 {offsets = [0, 64], sizes = [2, 32], strides = [1, 1]} : vector<2x128xf32> to vector<2x32xf32>
    %454 = math.tanh %453 : vector<2x32xf32>
    %455 = vector.extract_strided_slice %440 {offsets = [0, 96], sizes = [2, 32], strides = [1, 1]} : vector<2x128xf32> to vector<2x32xf32>
    %456 = arith.negf %455 : vector<2x32xf32>
    %457 = math.exp %456 : vector<2x32xf32>
    %cst_91 = arith.constant 1.000000e+00 : f32
    %458 = vector.broadcast %cst_91 : f32 to vector<2x32xf32>
    %459 = arith.addf %458, %457 : vector<2x32xf32>
    %460 = arith.divf %458, %459 : vector<2x32xf32>
    %461 = arith.mulf %452, %403 : vector<2x32xf32>
    %462 = arith.mulf %446, %454 : vector<2x32xf32>
    %463 = arith.addf %461, %462 : vector<2x32xf32>
    %464 = math.tanh %463 : vector<2x32xf32>
    %465 = arith.mulf %460, %464 : vector<2x32xf32>
    %cst_92 = arith.constant dense<0.000000e+00> : vector<2x128xf32>
    %466 = tpu.matmul %465, %6, %cst_92 {dimension_numbers = #tpu.dot_dimension_numbers<[1], [0], [0], [1], [0, 0, 1, 1], [], []>} : vector<2x32xf32>, vector<32x128xf32>, vector<2x128xf32> -> vector<2x128xf32>
    %cst_93 = arith.constant dense<0.000000e+00> : vector<2x128xf32>
    %467 = tpu.matmul %434, %7, %cst_93 {dimension_numbers = #tpu.dot_dimension_numbers<[1], [0], [0], [1], [0, 0, 1, 1], [], []>} : vector<2x32xf32>, vector<32x128xf32>, vector<2x128xf32> -> vector<2x128xf32>
    %468 = arith.addf %466, %467 : vector<2x128xf32>
    %469 = arith.addf %468, %10 : vector<2x128xf32>
    %470 = vector.extract_strided_slice %469 {offsets = [0, 0], sizes = [2, 32], strides = [1, 1]} : vector<2x128xf32> to vector<2x32xf32>
    %471 = arith.negf %470 : vector<2x32xf32>
    %472 = math.exp %471 : vector<2x32xf32>
    %cst_94 = arith.constant 1.000000e+00 : f32
    %473 = vector.broadcast %cst_94 : f32 to vector<2x32xf32>
    %474 = arith.addf %473, %472 : vector<2x32xf32>
    %475 = arith.divf %473, %474 : vector<2x32xf32>
    %476 = vector.extract_strided_slice %469 {offsets = [0, 32], sizes = [2, 32], strides = [1, 1]} : vector<2x128xf32> to vector<2x32xf32>
    %477 = arith.negf %476 : vector<2x32xf32>
    %478 = math.exp %477 : vector<2x32xf32>
    %cst_95 = arith.constant 1.000000e+00 : f32
    %479 = vector.broadcast %cst_95 : f32 to vector<2x32xf32>
    %480 = arith.addf %479, %478 : vector<2x32xf32>
    %481 = arith.divf %479, %480 : vector<2x32xf32>
    %482 = vector.extract_strided_slice %469 {offsets = [0, 64], sizes = [2, 32], strides = [1, 1]} : vector<2x128xf32> to vector<2x32xf32>
    %483 = math.tanh %482 : vector<2x32xf32>
    %484 = vector.extract_strided_slice %469 {offsets = [0, 96], sizes = [2, 32], strides = [1, 1]} : vector<2x128xf32> to vector<2x32xf32>
    %485 = arith.negf %484 : vector<2x32xf32>
    %486 = math.exp %485 : vector<2x32xf32>
    %cst_96 = arith.constant 1.000000e+00 : f32
    %487 = vector.broadcast %cst_96 : f32 to vector<2x32xf32>
    %488 = arith.addf %487, %486 : vector<2x32xf32>
    %489 = arith.divf %487, %488 : vector<2x32xf32>
    %490 = arith.mulf %481, %432 : vector<2x32xf32>
    %491 = arith.mulf %475, %483 : vector<2x32xf32>
    %492 = arith.addf %490, %491 : vector<2x32xf32>
    %493 = math.tanh %492 : vector<2x32xf32>
    %494 = arith.mulf %489, %493 : vector<2x32xf32>
    %c0_97 = arith.constant 0 : index
    %c0_98 = arith.constant 0 : index
    %495 = vector.load %arg7[%c0_97, %c0_98] : memref<32x8xf32, #tpu.memory_space<vmem>>, vector<32x8xf32>
    %cst_99 = arith.constant dense<0.000000e+00> : vector<2x8xf32>
    %496 = tpu.matmul %494, %495, %cst_99 {dimension_numbers = #tpu.dot_dimension_numbers<[1], [0], [0], [1], [0, 0, 1, 1], [], []>} : vector<2x32xf32>, vector<32x8xf32>, vector<2x8xf32> -> vector<2x8xf32>
    %c0_100 = arith.constant 0 : index
    %c0_101 = arith.constant 0 : index
    %497 = vector.load %arg8[%c0_100, %c0_101] : memref<1x8xf32, #tpu.memory_space<vmem>>, vector<1x8xf32>
    %498 = vector.broadcast %497 : vector<1x8xf32> to vector<2x8xf32>
    %499 = arith.addf %496, %498 : vector<2x8xf32>
    %c0_102 = arith.constant 0 : index
    %c0_103 = arith.constant 0 : index
    %500 = vector.load %arg9[%c0_102, %c0_103] : memref<2x8xf32, #tpu.memory_space<vmem>>, vector<2x8xf32>
    tpu.vector_store %arg9[%c0_102, %c0_103], %499 {strides = array<i32>} : memref<2x8xf32, #tpu.memory_space<vmem>>, vector<2x8xf32>,
    return
  }
}

</mosaic_0001>

<bundles_post_ra>
// kernel: lstm_model_forward.1
= control target key start
LH: loop header
LB: loop body
LE: loop exit
PB: predicated region body
PF: predicated region fallthrough
CT: control target
= control target key end

     0   :  { %14 = vsyncpa [#allocation3], 0  ;;  %s4524_s0 = inlined_call_operand.hbm [shape: f32[2,8,16], index: 0, kind: input, shape index: {}]   ;;  %s4525_s1 = inlined_call_operand.hbm [shape: f32[16,128], index: 1, kind: input, shape index: {}]   ;;  %s4526_s2 = inlined_call_operand.vmem [shape: f32[32,128], index: 2, kind: input, shape index: {}]   ;;  %s4527_s3 = inlined_call_operand.vmem [shape: f32[1,128], index: 3, kind: input, shape index: {}]   ;;  %s4528_s4 = inlined_call_operand.hbm [shape: f32[32,128], index: 4, kind: input, shape index: {}]   ;;  %s4529_s5 = inlined_call_operand.hbm [shape: f32[32,128], index: 5, kind: input, shape index: {}]   ;;  %s4530_s6 = inlined_call_operand.vmem [shape: f32[1,128], index: 6, kind: input, shape index: {}]   ;;  %s4531_s7 = inlined_call_operand.vmem [shape: f32[32,8], index: 7, kind: input, shape index: {}]   ;;  %s4532_s8 = inlined_call_operand.vmem [shape: f32[1,8], index: 8, kind: input, shape index: {}]   ;;  %s4533_s9 = inlined_call_operand.hbm [shape: f32[2,8], index: 9, kind: output, shape index: {}]  }
   0x1   :  { %15 = vsyncpa [#allocation6], 0 }
   0x2   :  { %16 = vsyncpa [#allocation9], 0 }
   0x3   :  { %17 = vsyncpa [#allocation4], 0  ;;  %s3950_s30 = smov [#allocation5]   ;;  %s3951_s11 = smov [#allocation2]  }
   0x4   :  { %s35_s10 = sshll.u32 %s3950_s30, 4  ;;  %s23_s12 = sshll.u32 %s3951_s11, 4  ;;  %s36_s10 = int_to_ptr.vmem [resolvable:$true] %s35_s10  ;;  %s4012_s12 = int_to_ptr.vmem [resolvable:$true] %s23_s12 }
   0x5   :  { %s3832_s15 = scalar_lea.hbm %s4525_s1, 256 }
   0x6   :  { %p3833_p0 = scmp.ne.s32.totalorder %s4525_s1, %s3832_s15  ;;  %p3836_p1 = scmp.lt.u32.totalorder %s3832_s15, %s4525_s1 }
   0x8   :  { %p3838_p2 = pnand %p3836_p1, %p3833_p0 }
   0xa   :  { %3841 = shalt.err (!%p3838_p2)
}
   0xb   :  { %s3842_s20 = scalar_lea.vmem %s36_s10, 256  ;;  %p3847_p4 = scmp.lt.s32.totalorder %s36_s10, %s36_s10 }
   0xc   :  { %p3843_p3 = scmp.ne.s32.totalorder %s36_s10, %s3842_s20  ;;  %p3848_p5 = scmp.lt.s32.totalorder %s3842_s20, %s3842_s20 }
   0xe   :  { %p3849_p6 = por %p3848_p5, %p3847_p4 }
  0x10   :  { %p3850_p7 = pnand %p3849_p6, %p3843_p3 }
  0x12   :  { %3853 = shalt.err (!%p3850_p7)
}
  0x13   :  { %s3952_s21 = smov 128   ;;  %s3953_s22 = smov 8  }
  0x14   :  { %41 = dma.hbm_to_vmem [thread:$0]  %s4525_s1, 256, %s36_s10, [#allocation6], %s3952_s21, %s3952_s21, %s3953_s22  }
  0x15   :  { %s3854_s27 = scalar_lea.hbm %s4524_s0, 256 }
  0x16   :  { %p3855_p8 = scmp.ne.s32.totalorder %s4524_s0, %s3854_s27  ;;  %p3858_p9 = scmp.lt.u32.totalorder %s3854_s27, %s4524_s0 }
  0x18   :  { %p3860_p10 = pnand %p3858_p9, %p3855_p8 }
  0x1a   :  { %3863 = shalt.err (!%p3860_p10)
}
  0x1b   :  { %s3864_s13 = scalar_lea.vmem %s4012_s12, 256  ;;  %p3869_p12 = scmp.lt.s32.totalorder %s4012_s12, %s4012_s12 }
  0x1c   :  { %p3865_p11 = scmp.ne.s32.totalorder %s4012_s12, %s3864_s13  ;;  %p3870_p13 = scmp.lt.s32.totalorder %s3864_s13, %s3864_s13 }
  0x1e   :  { %p3871_p0 = por %p3870_p13, %p3869_p12 }
  0x20   :  { %p3872_p1 = pnand %p3871_p0, %p3865_p11 }
  0x22   :  { %3875 = shalt.err (!%p3872_p1)
}
  0x23   :  { %29 = dma.hbm_to_vmem [thread:$0]  %s4524_s0, 256, %s4012_s12, [#allocation3], %s3952_s21, %s3952_s21, %s3953_s22  }
  0x24   :  { %s3954_s14 = smov [#allocation7]   ;;  %s3955_s16 = smov [#allocation8]  }
  0x25   :  { %s51_s15 = sshll.u32 %s3954_s14, 4  ;;  %s63_s17 = sshll.u32 %s3955_s16, 4  ;;  %s52_s15 = int_to_ptr.vmem [resolvable:$true] %s51_s15  ;;  %s4049_s17 = int_to_ptr.vmem [resolvable:$true] %s63_s17 }
  0x26   :  { %s3876_s20 = scalar_lea.hbm %s4528_s4, 512 }
  0x27   :  { %p3877_p2 = scmp.ne.s32.totalorder %s4528_s4, %s3876_s20  ;;  %p3880_p3 = scmp.lt.u32.totalorder %s3876_s20, %s4528_s4 }
  0x29   :  { %p3882_p4 = pnand %p3880_p3, %p3877_p2 }
  0x2b   :  { %3885 = shalt.err (!%p3882_p4)
}
  0x2c   :  { %s3886_s0 = scalar_lea.vmem %s52_s15, 512  ;;  %p3891_p6 = scmp.lt.s32.totalorder %s52_s15, %s52_s15 }
  0x2d   :  { %p3887_p5 = scmp.ne.s32.totalorder %s52_s15, %s3886_s0  ;;  %p3892_p7 = scmp.lt.s32.totalorder %s3886_s0, %s3886_s0 }
  0x2f   :  { %p3893_p8 = por %p3892_p7, %p3891_p6 }
  0x31   :  { %p3894_p9 = pnand %p3893_p8, %p3887_p5 }
  0x33   :  { %3897 = shalt.err (!%p3894_p9)
}
  0x34   :  { %57 = dma.hbm_to_vmem [thread:$0]  %s4528_s4, 512, %s52_s15, [#allocation6], %s3952_s21, %s3952_s21, %s3953_s22  }
  0x35   :  { %s3898_s30 = scalar_lea.hbm %s4529_s5, 512 }
  0x36   :  { %p3899_p10 = scmp.ne.s32.totalorder %s4529_s5, %s3898_s30  ;;  %p3902_p11 = scmp.lt.u32.totalorder %s3898_s30, %s4529_s5 }
  0x38   :  { %p3904_p12 = pnand %p3902_p11, %p3899_p10 }
  0x3a   :  { %3907 = shalt.err (!%p3904_p12)
}
  0x3b   :  { %s3908_s14 = scalar_lea.vmem %s4049_s17, 512  ;;  %p3913_p0 = scmp.lt.s32.totalorder %s4049_s17, %s4049_s17 }
  0x3c   :  { %p3909_p13 = scmp.ne.s32.totalorder %s4049_s17, %s3908_s14  ;;  %p3914_p1 = scmp.lt.s32.totalorder %s3908_s14, %s3908_s14 }
  0x3e   :  { %p3915_p2 = por %p3914_p1, %p3913_p0 }
  0x40   :  { %p3916_p3 = pnand %p3915_p2, %p3909_p13 }
  0x42   :  { %3919 = shalt.err (!%p3916_p3)
}
  0x43   :  { %69 = dma.hbm_to_vmem [thread:$0]  %s4529_s5, 512, %s4049_s17, [#allocation9], %s3952_s21, %s3952_s21, %s3953_s22  }
  0x44   :  { %3942 = dma.done.wait [#allocation3], 256  }
  0x45   :  { %3943 = vsyncadd [#allocation3], 4294967040 }
  0x46   :  { %3944 = dma.done.wait [#allocation6], 768  }
  0x47   :  { %3945 = vsyncadd [#allocation6], 4294966528 }
  0x48   :  { %3946 = dma.done.wait [#allocation9], 512  }
  0x49   :  { %3947 = vsyncadd [#allocation9], 4294966784  ;;  %v3956_v0 = vmov 0.0|0.0   ;;  %vm3957_vm0 = vmmov 0   ;;  %v3958_v1 = vmov 0.0   ;;  %v92_v2 = vld [vmem:[%s4526_s2] sm:$0xff] }
  0x4a   :  { %3514 = vmatprep.subr.bf16.mxu0 %v3956_v0  ;;  %3520 = vmatprep.subr.bf16.mxu1 %v3956_v0  ;;  %v93_v3 = vld [vmem:[%s4526_s2 + $0x8] sm:$0xff]  ;;  %v90_v4 = vld [vmem:[#allocation5] sm:$0xff]  ;;  %v91_v6 = vld [vmem:[#allocation5 + $0x8] sm:$0xff]  ;;  %vm195_vm1 = vcmask 1041409   ;;  %vm197_vm2 = vcmask 130048   ;;  %s3959_s24 = smov 64  }
  0x4b   :  { %3198 = vmatprep.mubr.msk.f32.mxu1 %vm3957_vm0, %v3958_v1  ;;  %3191 = vmatprep.mubr.msk.f32.mxu0 %vm3957_vm0, %v3958_v1  ;;  %v4098_v5 = vpack.c.bf16 %v93_v3, %v92_v2  ;;  %v94_v7 = vld [vmem:[%s4526_s2 + $0x10] sm:$0xff]  ;;  %v95_v8 = vld [vmem:[%s4526_s2 + $0x18] sm:$0xff]  ;;  %v4106_v9 = vpack.c.bf16 %v91_v6, %v90_v4  ;;  %v4108_v10 = vld [vmem:[#allocation2] sm:$0xff]  ;;  %s3960_s25 = smov 32   ;;  %vm118_vm3 = vcmask 261120   ;;  %vm2965_vm4 = vcmask 58368  }
  0x4c   :  { %v4110_v11 = vld [vmem:[#allocation2 + $0x8] sm:$0xff]  ;;  %v4113_v12 = vpack.c.bf16 %v95_v8, %v94_v7  ;;  %v4132_v17 = vld [vmem:[%s4527_s3] ss:$0 sm:$0xff]  ;;  %v109_v34 = vld [vmem:[#allocation8 + $0x10] sm:$0xff]  ;;  %v535_v49 = vrot.slane %v4108_v10, 1 }
  0x4d   :  { %3516 = vmatpush3.bf16.msra.mxu0 %v4098_v5  ;;  %v194_v13 = vrot.slane %v4110_v11, 7  ;;  %3522 = vmatpush3.bf16.msra.mxu1 %v4106_v9  ;;  %v107_v32 = vld [vmem:[#allocation8] sm:$0xff]  ;;  %v108_v33 = vld [vmem:[#allocation8 + $0x8] sm:$0xff]  ;;  %v110_v36 = vld [vmem:[#allocation8 + $0x18] sm:$0xff] }
  0x4e   :  { %3517 = vmatprep.subr.bf16.mxu0 %v3956_v0  ;;  %3523 = vmatprep.subr.bf16.mxu1 %v3956_v0  ;;  %v4140_v35 = vpack.c.bf16 %v108_v33, %v107_v32  ;;  %v103_v37 = vld [vmem:[#allocation7] sm:$0xff]  ;;  %v104_v38 = vld [vmem:[#allocation7 + $0x8] sm:$0xff]  ;;  %v105_v40 = vld [vmem:[#allocation7 + $0x10] sm:$0xff]  ;;  %v4145_v42 = vpack.c.bf16 %v110_v36, %v109_v34  ;;  %v536_v51 = vsel %vm195_vm1, %v4110_v11, %v535_v49  ;;  %v879_v34 = vrot.slane %v4108_v10, 2 }
  0x4f   :  { %v196_v14 = vsel %vm195_vm1, %v194_v13, %v4108_v10  ;;  %v4142_v39 = vpack.c.bf16 %v104_v38, %v103_v37  ;;  %v106_v41 = vld [vmem:[#allocation7 + $0x18] sm:$0xff]  ;;  %v4190_v52 = vld [vmem:[%s4530_s6] ss:$0 sm:$0xff]  ;;  %v880_v36 = vrot.slane %v4110_v11, 1 }
  0x50   :  { %3199 = vmatmul.mubr.msk.f32.vlgmr.msra.gmra.mrb[0].mxu1 %vm197_vm2, %v196_v14  ;;  %v4149_v43 = vpack.c.bf16 %v106_v41, %v105_v40 }
  0x51   :  { %3519 = vmatpush3.bf16.msra.mxu0 %v4113_v12  ;;  %3209 = vmatprep.mubr.msk.f32.mxu1 %vm3957_vm0, %v3958_v1  ;;  %v881_v38 = vsel %vm195_vm1, %v880_v36, %v879_v34 }
  0x52   :  { %3529 = vmatprep.subr.bf16.mxu0 %v3956_v0  ;;  %3525 = vmatpush3.bf16.msra.mxu1 %v4140_v35 }
  0x53   :  { %3526 = vmatprep.subr.bf16.mxu1 %v3956_v0 }
  0x54   :  { %3192 = vmatmul.mubr.f32.vlgmr.msra.gmra.mrb[0].mxu0 %v3958_v1 }
  0x55   :  { %3220 = vmatprep.mubr.msk.f32.mxu0 %vm3957_vm0, %v3958_v1  ;;  %3531 = vmatpush3.bf16.msra.mxu0 %v4142_v39 }
  0x56   :  { %3532 = vmatprep.subr.bf16.mxu0 %v3956_v0  ;;  %3528 = vmatpush3.bf16.msra.mxu1 %v4145_v42 }
  0x57   :  { %3535 = vmatprep.subr.bf16.mxu1 %v3956_v0 }
  0x59   :  { %3534 = vmatpush3.bf16.msra.mxu0 %v4149_v43  ;;  %3210 = vmatmul.mubr.f32.vlgmr.msra.gmra.mrb[2].mxu1 %v3958_v1 }
  0x5a   :  { %3544 = vmatprep.subr.bf16.mxu0 %v3956_v0  ;;  %3537 = vmatpush3.bf16.msra.mxu1 %v4098_v5 }
  0x5b   :  { %3538 = vmatprep.subr.bf16.mxu1 %v3956_v0  ;;  %3231 = vmatprep.mubr.msk.f32.mxu1 %vm3957_vm0, %v3958_v1 }
  0x5e   :  { %3540 = vmatpush3.bf16.msra.mxu1 %v4113_v12 }
  0x5f   :  { %3541 = vmatprep.subr.bf16.mxu1 %v3956_v0 }
 0x123   :  { %v266_v15 = vpop.f32.mrb[0].mxu1 }
 0x124   :  { %v3200_v16 = vpop.f32.mrb[1].mxu1 }
 0x127   :  { %v188_v18 = vpop.f32.mrb[0].mxu0 }
 0x128   :  { %v267_v19 = vadd.f32 %v266_v15, %v188_v18  ;;  %v3193_v20 = vpop.f32.mrb[1].mxu0 }
 0x12a   :  { %v270_v21 = vadd.f32 %v4132_v17, %v267_v19 }
 0x12c   :  { %3700 = vtanh.f32 %v270_v21  ;;  %v2987_v23 = vmul.f32 -1.442695, %v270_v21  ;;  %v361_v47 = vpop.f32.mrb[2].mxu1 }
 0x12d   :  { %v3211_v48 = vpop.f32.mrb[3].mxu1 }
 0x12e   :  { %3702 = vpow2.f32 %v2987_v23 }
 0x136   :  { %v3701_v22 = vpop.eup %3700 }
 0x137   :  { %280 = vrot.lane.b32.xlu0 %v3701_v22, %s3959_s24 }
 0x138   :  { %v3703_v24 = vpop.eup %3702 }
 0x139   :  { %v274_v25 = vadd.f32 1.0, %v3703_v24 }
 0x13b   :  { %3704 = vrcp.f32 %v274_v25 }
 0x145   :  { %v3705_v26 = vpop.eup %3704 }
 0x146   :  { %v278_v29 = vmul.f32 0.0, %v3705_v26 }
 0x1a9   :  { %v281_v27 = vpop.permute.xlu0 %280 }
 0x1aa   :  { %v283_v28 = vmul.f32 %v3705_v26, %v281_v27 }
 0x1ac   :  { %285 = vrot.lane.b32.xlu0 %v283_v28, %s3960_s25 }
 0x21e   :  { %v286_v30 = vpop.permute.xlu0 %285 }
 0x21f   :  { %v4137_v31 = vadd.f32 %v286_v30, %v278_v29 }
 0x221   :  { %3706 = vtanh.f32 %v4137_v31 }
 0x22b   :  { %v3707_v44 = vpop.eup %3706 }
 0x22c   :  { %291 = vrot.lane.b32.xlu1 %v3707_v44, %s3959_s24 }
 0x29e   :  { %v292_v45 = vpop.permute.xlu1 %291 }
 0x29f   :  { %v294_v46 = vmul.f32 %v3705_v26, %v292_v45 }
 0x2a1   :  { %366 = vrot.lane.b32.xlu1 %v294_v46, %s3960_s25 }
 0x313   :  { %v367_v50 = vpop.permute.xlu1 %366 }
 0x314   :  { %3221 = vmatmul.mubr.msk.f32.vlgmr.msra.gmra.mrb[2].mxu0 %vm118_vm3, %v367_v50  ;;  %3232 = vmatmul.mubr.msk.f32.vlgmr.msra.gmra.mrb[4].mxu1 %vm118_vm3, %v367_v50 }
 0x315   :  { %3543 = vmatpush3.bf16.msra.mxu1 %v4106_v9  ;;  %3238 = vmatprep.mubr.msk.f32.mxu1 %vm3957_vm0, %v3958_v1 }
 0x316   :  { %3546 = vmatpush3.bf16.msra.mxu0 %v4140_v35  ;;  %3550 = vmatprep.subr.bf16.mxu1 %v3956_v0 }
 0x317   :  { %3547 = vmatprep.subr.bf16.mxu0 %v3956_v0  ;;  %3249 = vmatprep.mubr.msk.f32.mxu0 %vm3957_vm0, %v3958_v1 }
 0x318   :  { %3239 = vmatmul.mubr.msk.f32.vlgmr.msra.gmra.mrb[6].mxu1 %vm197_vm2, %v536_v51 }
 0x319   :  { %3552 = vmatpush3.bf16.msra.mxu1 %v4142_v39  ;;  %3260 = vmatprep.mubr.msk.f32.mxu1 %vm3957_vm0, %v3958_v1 }
 0x31a   :  { %3549 = vmatpush3.bf16.msra.mxu0 %v4145_v42  ;;  %3553 = vmatprep.subr.bf16.mxu1 %v3956_v0 }
 0x31b   :  { %3556 = vmatprep.subr.bf16.mxu0 %v3956_v0 }
 0x31d   :  { %3555 = vmatpush3.bf16.msra.mxu1 %v4149_v43 }
 0x31e   :  { %3562 = vmatprep.subr.bf16.mxu1 %v3956_v0 }
 0x3e7   :  { %v436_v53 = vpop.f32.mrb[2].mxu0  ;;  %v531_v54 = vpop.f32.mrb[4].mxu1 }
 0x3e8   :  { %v437_v55 = vadd.f32 %v436_v53, %v361_v47  ;;  %v3222_v56 = vpop.f32.mrb[3].mxu0  ;;  %v3233_v57 = vpop.f32.mrb[5].mxu1 }
 0x3ea   :  { %v440_v58 = vadd.f32 %v4190_v52, %v437_v55 }
 0x3eb   :  { %v605_v59 = vpop.f32.mrb[6].mxu1 }
 0x3ec   :  { %3708 = vtanh.f32 %v440_v58  ;;  %v606_v60 = vadd.f32 %v605_v59, %v531_v54  ;;  %v3240_v61 = vpop.f32.mrb[7].mxu1  ;;  %v2989_v3 = vmul.f32 -1.442695, %v440_v58 }
 0x3ee   :  { %v609_v62 = vadd.f32 %v4132_v17, %v606_v60 }
 0x3f0   :  { %3710 = vtanh.f32 %v609_v62  ;;  %v2992_v4 = vmul.f32 -1.442695, %v609_v62 }
 0x3f1   :  { %3712 = vpow2.f32 %v2989_v3 }
 0x3f2   :  { %3714 = vpow2.f32 %v2992_v4 }
 0x3f6   :  { %v3709_v63 = vpop.eup %3708 }
 0x3f7   :  { %450 = vrot.lane.b32.xlu0 %v3709_v63, %s3959_s24 }
 0x3fa   :  { %v3711_v2 = vpop.eup %3710 }
 0x3fb   :  { %619 = vrot.lane.b32.xlu1 %v3711_v2, %s3959_s24  ;;  %v3713_v6 = vpop.eup %3712 }
 0x3fc   :  { %v444_v7 = vadd.f32 1.0, %v3713_v6  ;;  %v3715_v8 = vpop.eup %3714 }
 0x3fd   :  { %v613_v13 = vadd.f32 1.0, %v3715_v8 }
 0x3fe   :  { %3716 = vrcp.f32 %v444_v7 }
 0x3ff   :  { %3718 = vrcp.f32 %v613_v13 }
 0x408   :  { %v3717_v14 = vpop.eup %3716 }
 0x409   :  { %v3719_v18 = vpop.eup %3718  ;;  %v448_v21 = vmul.f32 0.0, %v3717_v14 }
 0x40a   :  { %v617_v24 = vmul.f32 %v3719_v18, %v4137_v31 }
 0x469   :  { %v451_v15 = vpop.permute.xlu0 %450 }
 0x46a   :  { %v453_v16 = vmul.f32 %v3717_v14, %v451_v15 }
 0x46c   :  { %455 = vrot.lane.b32.xlu0 %v453_v16, %s3960_s25 }
 0x46d   :  { %v620_v19 = vpop.permute.xlu1 %619 }
 0x46e   :  { %v622_v20 = vmul.f32 %v3719_v18, %v620_v19 }
 0x470   :  { %624 = vrot.lane.b32.xlu1 %v622_v20, %s3960_s25 }
 0x4de   :  { %v456_v22 = vpop.permute.xlu0 %455 }
 0x4df   :  { %v4198_v23 = vadd.f32 %v456_v22, %v448_v21 }
 0x4e1   :  { %3720 = vtanh.f32 %v4198_v23 }
 0x4e2   :  { %v625_v25 = vpop.permute.xlu1 %624 }
 0x4e3   :  { %v4202_v26 = vadd.f32 %v625_v25, %v617_v24 }
 0x4e5   :  { %3722 = vtanh.f32 %v4202_v26 }
 0x4eb   :  { %v3721_v27 = vpop.eup %3720 }
 0x4ec   :  { %461 = vrot.lane.b32.xlu0 %v3721_v27, %s3959_s24  ;;  %v1225_v27 = vrot.slane %v4110_v11, 2 }
 0x4ef   :  { %v3723_v28 = vpop.eup %3722 }
 0x4f0   :  { %630 = vrot.lane.b32.xlu1 %v3723_v28, %s3959_s24 }
 0x55e   :  { %v462_v29 = vpop.permute.xlu0 %461 }
 0x55f   :  { %v464_v30 = vmul.f32 %v3717_v14, %v462_v29 }
 0x561   :  { %635 = vrot.lane.b32.xlu0 %v464_v30, %s3960_s25 }
 0x562   :  { %v631_v32 = vpop.permute.xlu1 %630 }
 0x563   :  { %v633_v33 = vmul.f32 %v3719_v18, %v631_v32 }
 0x565   :  { %710 = vrot.lane.b32.xlu1 %v633_v33, %s3960_s25 }
 0x5d3   :  { %v636_v31 = vpop.permute.xlu0 %635 }
 0x5d4   :  { %3250 = vmatmul.mubr.msk.f32.vlgmr.msra.gmra.mrb[4].mxu0 %vm118_vm3, %v636_v31 }
 0x5d5   :  { %3558 = vmatpush3.bf16.msra.mxu0 %v4098_v5  ;;  %3271 = vmatprep.mubr.msk.f32.mxu0 %vm3957_vm0, %v3958_v1 }
 0x5d6   :  { %3559 = vmatprep.subr.bf16.mxu0 %v3956_v0 }
 0x5d7   :  { %v711_v37 = vpop.permute.xlu1 %710 }
 0x5d8   :  { %3261 = vmatmul.mubr.msk.f32.vlgmr.msra.gmra.mrb[8].mxu1 %vm118_vm3, %v711_v37 }
 0x5d9   :  { %3561 = vmatpush3.bf16.msra.mxu0 %v4113_v12  ;;  %3564 = vmatpush3.bf16.msra.mxu1 %v4106_v9 }
 0x5da   :  { %3278 = vmatprep.mubr.msk.f32.mxu1 %vm3957_vm0, %v3958_v1  ;;  %3565 = vmatprep.subr.bf16.mxu1 %v3956_v0 }
 0x5db   :  { %3571 = vmatprep.subr.bf16.mxu0 %v3956_v0 }
 0x5dc   :  { %3272 = vmatmul.mubr.msk.f32.vlgmr.msra.gmra.mrb[6].mxu0 %vm118_vm3, %v711_v37  ;;  %3279 = vmatmul.mubr.msk.f32.vlgmr.msra.gmra.mrb[10].mxu1 %vm197_vm2, %v881_v38 }
 0x5dd   :  { %3567 = vmatpush3.bf16.msra.mxu1 %v4140_v35  ;;  %3573 = vmatpush3.bf16.msra.mxu0 %v4142_v39 }
 0x5de   :  { %3568 = vmatprep.subr.bf16.mxu1 %v3956_v0  ;;  %3289 = vmatprep.mubr.msk.f32.mxu1 %vm3957_vm0, %v3958_v1 }
 0x5df   :  { %3574 = vmatprep.subr.bf16.mxu0 %v3956_v0  ;;  %3300 = vmatprep.mubr.msk.f32.mxu0 %vm3957_vm0, %v3958_v1 }
 0x5e1   :  { %3570 = vmatpush3.bf16.msra.mxu1 %v4145_v42  ;;  %3576 = vmatpush3.bf16.msra.mxu0 %v4149_v43 }
 0x5e2   :  { %3577 = vmatprep.subr.bf16.mxu1 %v3956_v0  ;;  %3583 = vmatprep.subr.bf16.mxu0 %v3956_v0 }
 0x6a7   :  { %v705_v40 = vpop.f32.mrb[4].mxu0 }
 0x6a8   :  { %v3251_v41 = vpop.f32.mrb[5].mxu0 }
 0x6ab   :  { %v780_v44 = vpop.f32.mrb[8].mxu1 }
 0x6ac   :  { %v781_v45 = vadd.f32 %v780_v44, %v705_v40  ;;  %v3262_v46 = vpop.f32.mrb[9].mxu1 }
 0x6ae   :  { %v784_v47 = vadd.f32 %v4190_v52, %v781_v45 }
 0x6af   :  { %v875_v48 = vpop.f32.mrb[6].mxu0  ;;  %v950_v49 = vpop.f32.mrb[10].mxu1 }
 0x6b0   :  { %3724 = vtanh.f32 %v784_v47  ;;  %v3273_v50 = vpop.f32.mrb[7].mxu0  ;;  %v951_v51 = vadd.f32 %v950_v49, %v875_v48  ;;  %v3280_v53 = vpop.f32.mrb[11].mxu1  ;;  %v2995_v57 = vmul.f32 -1.442695, %v784_v47 }
 0x6b2   :  { %v954_v54 = vadd.f32 %v4132_v17, %v951_v51 }
 0x6b4   :  { %3726 = vtanh.f32 %v954_v54  ;;  %v2998_v58 = vmul.f32 -1.442695, %v954_v54 }
 0x6b5   :  { %3728 = vpow2.f32 %v2995_v57 }
 0x6b6   :  { %3730 = vpow2.f32 %v2998_v58 }
 0x6ba   :  { %v3725_v55 = vpop.eup %3724 }
 0x6bb   :  { %794 = vrot.lane.b32.xlu0 %v3725_v55, %s3959_s24 }
 0x6be   :  { %v3727_v56 = vpop.eup %3726 }
 0x6bf   :  { %964 = vrot.lane.b32.xlu1 %v3727_v56, %s3959_s24  ;;  %v3729_v59 = vpop.eup %3728 }
 0x6c0   :  { %v788_v60 = vadd.f32 1.0, %v3729_v59  ;;  %v3731_v61 = vpop.eup %3730 }
 0x6c1   :  { %v958_v62 = vadd.f32 1.0, %v3731_v61 }
 0x6c2   :  { %3732 = vrcp.f32 %v788_v60 }
 0x6c3   :  { %3734 = vrcp.f32 %v958_v62 }
 0x6cc   :  { %v3733_v63 = vpop.eup %3732 }
 0x6cd   :  { %v3735_v4 = vpop.eup %3734  ;;  %v792_v8 = vmul.f32 %v3733_v63, %v4198_v23 }
 0x6ce   :  { %v962_v15 = vmul.f32 %v3735_v4, %v4202_v26  ;;  %v1224_v26 = vrot.slane %v4108_v10, 3 }
 0x6d0   :  { %v1226_v29 = vsel %vm195_vm1, %v1225_v27, %v1224_v26 }
 0x72d   :  { %v795_v2 = vpop.permute.xlu0 %794 }
 0x72e   :  { %v797_v3 = vmul.f32 %v3733_v63, %v795_v2 }
 0x730   :  { %799 = vrot.lane.b32.xlu0 %v797_v3, %s3960_s25 }
 0x731   :  { %v965_v6 = vpop.permute.xlu1 %964 }
 0x732   :  { %v967_v7 = vmul.f32 %v3735_v4, %v965_v6 }
 0x734   :  { %969 = vrot.lane.b32.xlu1 %v967_v7, %s3960_s25 }
 0x7a2   :  { %v800_v13 = vpop.permute.xlu0 %799 }
 0x7a3   :  { %v4245_v14 = vadd.f32 %v800_v13, %v792_v8 }
 0x7a5   :  { %3736 = vtanh.f32 %v4245_v14 }
 0x7a6   :  { %v970_v16 = vpop.permute.xlu1 %969 }
 0x7a7   :  { %v4249_v18 = vadd.f32 %v970_v16, %v962_v15 }
 0x7a9   :  { %3738 = vtanh.f32 %v4249_v18 }
 0x7af   :  { %v3737_v19 = vpop.eup %3736 }
 0x7b0   :  { %805 = vrot.lane.b32.xlu0 %v3737_v19, %s3959_s24  ;;  %v1570_v19 = vrot.slane %v4110_v11, 3 }
 0x7b3   :  { %v3739_v20 = vpop.eup %3738 }
 0x7b4   :  { %975 = vrot.lane.b32.xlu1 %v3739_v20, %s3959_s24 }
 0x822   :  { %v806_v21 = vpop.permute.xlu0 %805 }
 0x823   :  { %v808_v22 = vmul.f32 %v3733_v63, %v806_v21 }
 0x825   :  { %980 = vrot.lane.b32.xlu0 %v808_v22, %s3960_s25 }
 0x826   :  { %v976_v23 = vpop.permute.xlu1 %975 }
 0x827   :  { %v978_v24 = vmul.f32 %v3735_v4, %v976_v23 }
 0x829   :  { %1055 = vrot.lane.b32.xlu1 %v978_v24, %s3960_s25 }
 0x897   :  { %v981_v25 = vpop.permute.xlu0 %980 }
 0x898   :  { %3290 = vmatmul.mubr.msk.f32.vlgmr.msra.gmra.mrb[12].mxu1 %vm118_vm3, %v981_v25 }
 0x899   :  { %3579 = vmatpush3.bf16.msra.mxu1 %v4098_v5  ;;  %3311 = vmatprep.mubr.msk.f32.mxu1 %vm3957_vm0, %v3958_v1 }
 0x89a   :  { %3580 = vmatprep.subr.bf16.mxu1 %v3956_v0 }
 0x89b   :  { %v1056_v28 = vpop.permute.xlu1 %1055 }
 0x89c   :  { %3301 = vmatmul.mubr.msk.f32.vlgmr.msra.gmra.mrb[8].mxu0 %vm118_vm3, %v1056_v28 }
 0x89d   :  { %3582 = vmatpush3.bf16.msra.mxu1 %v4113_v12  ;;  %3585 = vmatpush3.bf16.msra.mxu0 %v4106_v9 }
 0x89e   :  { %3318 = vmatprep.mubr.msk.f32.mxu0 %vm3957_vm0, %v3958_v1  ;;  %3586 = vmatprep.subr.bf16.mxu0 %v3956_v0 }
 0x89f   :  { %3592 = vmatprep.subr.bf16.mxu1 %v3956_v0 }
 0x8a0   :  { %3312 = vmatmul.mubr.msk.f32.vlgmr.msra.gmra.mrb[14].mxu1 %vm118_vm3, %v1056_v28  ;;  %3319 = vmatmul.mubr.msk.f32.vlgmr.msra.gmra.mrb[10].mxu0 %vm197_vm2, %v1226_v29 }
 0x8a1   :  { %3588 = vmatpush3.bf16.msra.mxu0 %v4140_v35  ;;  %3594 = vmatpush3.bf16.msra.mxu1 %v4142_v39 }
 0x8a2   :  { %3589 = vmatprep.subr.bf16.mxu0 %v3956_v0  ;;  %3329 = vmatprep.mubr.msk.f32.mxu0 %vm3957_vm0, %v3958_v1 }
 0x8a3   :  { %3595 = vmatprep.subr.bf16.mxu1 %v3956_v0  ;;  %3340 = vmatprep.mubr.msk.f32.mxu1 %vm3957_vm0, %v3958_v1 }
 0x8a5   :  { %3591 = vmatpush3.bf16.msra.mxu0 %v4145_v42  ;;  %3597 = vmatpush3.bf16.msra.mxu1 %v4149_v43 }
 0x8a6   :  { %3598 = vmatprep.subr.bf16.mxu0 %v3956_v0  ;;  %3604 = vmatprep.subr.bf16.mxu1 %v3956_v0 }
 0x96b   :  { %v1050_v30 = vpop.f32.mrb[12].mxu1 }
 0x96c   :  { %v3291_v32 = vpop.f32.mrb[13].mxu1 }
 0x96f   :  { %v1125_v33 = vpop.f32.mrb[8].mxu0 }
 0x970   :  { %v1126_v31 = vadd.f32 %v1125_v33, %v1050_v30  ;;  %v3302_v34 = vpop.f32.mrb[9].mxu0 }
 0x972   :  { %v1129_v36 = vadd.f32 %v4190_v52, %v1126_v31 }
 0x973   :  { %v1220_v37 = vpop.f32.mrb[14].mxu1  ;;  %v1295_v38 = vpop.f32.mrb[10].mxu0 }
 0x974   :  { %3740 = vtanh.f32 %v1129_v36  ;;  %v3313_v40 = vpop.f32.mrb[15].mxu1  ;;  %v1296_v41 = vadd.f32 %v1295_v38, %v1220_v37  ;;  %v3320_v44 = vpop.f32.mrb[11].mxu0  ;;  %v3001_v48 = vmul.f32 -1.442695, %v1129_v36 }
 0x976   :  { %v1299_v45 = vadd.f32 %v4132_v17, %v1296_v41 }
 0x978   :  { %3742 = vtanh.f32 %v1299_v45  ;;  %v3004_v49 = vmul.f32 -1.442695, %v1299_v45 }
 0x979   :  { %3744 = vpow2.f32 %v3001_v48 }
 0x97a   :  { %3746 = vpow2.f32 %v3004_v49 }
 0x97e   :  { %v3741_v46 = vpop.eup %3740 }
 0x97f   :  { %1139 = vrot.lane.b32.xlu0 %v3741_v46, %s3959_s24 }
 0x982   :  { %v3743_v47 = vpop.eup %3742 }
 0x983   :  { %1309 = vrot.lane.b32.xlu1 %v3743_v47, %s3959_s24  ;;  %v3745_v50 = vpop.eup %3744 }
 0x984   :  { %v1133_v51 = vadd.f32 1.0, %v3745_v50  ;;  %v3747_v53 = vpop.eup %3746 }
 0x985   :  { %v1303_v54 = vadd.f32 1.0, %v3747_v53 }
 0x986   :  { %3748 = vrcp.f32 %v1133_v51 }
 0x987   :  { %3750 = vrcp.f32 %v1303_v54 }
 0x990   :  { %v3749_v55 = vpop.eup %3748 }
 0x991   :  { %v3751_v58 = vpop.eup %3750  ;;  %v1137_v61 = vmul.f32 %v3749_v55, %v4245_v14 }
 0x992   :  { %v1307_v2 = vmul.f32 %v3751_v58, %v4249_v18  ;;  %v1569_v18 = vrot.slane %v4108_v10, 4 }
 0x994   :  { %v1571_v21 = vsel %vm195_vm1, %v1570_v19, %v1569_v18 }
 0x9f1   :  { %v1140_v56 = vpop.permute.xlu0 %1139 }
 0x9f2   :  { %v1142_v57 = vmul.f32 %v3749_v55, %v1140_v56 }
 0x9f4   :  { %1144 = vrot.lane.b32.xlu0 %v1142_v57, %s3960_s25 }
 0x9f5   :  { %v1310_v59 = vpop.permute.xlu1 %1309 }
 0x9f6   :  { %v1312_v60 = vmul.f32 %v3751_v58, %v1310_v59 }
 0x9f8   :  { %1314 = vrot.lane.b32.xlu1 %v1312_v60, %s3960_s25 }
 0xa66   :  { %v1145_v62 = vpop.permute.xlu0 %1144 }
 0xa67   :  { %v4292_v63 = vadd.f32 %v1145_v62, %v1137_v61 }
 0xa69   :  { %3752 = vtanh.f32 %v4292_v63 }
 0xa6a   :  { %v1315_v3 = vpop.permute.xlu1 %1314 }
 0xa6b   :  { %v4296_v4 = vadd.f32 %v1315_v3, %v1307_v2 }
 0xa6d   :  { %3754 = vtanh.f32 %v4296_v4 }
 0xa73   :  { %v3753_v6 = vpop.eup %3752 }
 0xa74   :  { %1150 = vrot.lane.b32.xlu0 %v3753_v6, %s3959_s24  ;;  %v1915_v6 = vrot.slane %v4110_v11, 4 }
 0xa77   :  { %v3755_v7 = vpop.eup %3754 }
 0xa78   :  { %1320 = vrot.lane.b32.xlu1 %v3755_v7, %s3959_s24 }
 0xae6   :  { %v1151_v8 = vpop.permute.xlu0 %1150 }
 0xae7   :  { %v1153_v13 = vmul.f32 %v3749_v55, %v1151_v8 }
 0xae9   :  { %1325 = vrot.lane.b32.xlu0 %v1153_v13, %s3960_s25 }
 0xaea   :  { %v1321_v14 = vpop.permute.xlu1 %1320 }
 0xaeb   :  { %v1323_v15 = vmul.f32 %v3751_v58, %v1321_v14 }
 0xaed   :  { %1400 = vrot.lane.b32.xlu1 %v1323_v15, %s3960_s25 }
 0xb5b   :  { %v1326_v16 = vpop.permute.xlu0 %1325 }
 0xb5c   :  { %3330 = vmatmul.mubr.msk.f32.vlgmr.msra.gmra.mrb[12].mxu0 %vm118_vm3, %v1326_v16 }
 0xb5d   :  { %3600 = vmatpush3.bf16.msra.mxu0 %v4098_v5  ;;  %3351 = vmatprep.mubr.msk.f32.mxu0 %vm3957_vm0, %v3958_v1 }
 0xb5e   :  { %3601 = vmatprep.subr.bf16.mxu0 %v3956_v0 }
 0xb5f   :  { %v1401_v20 = vpop.permute.xlu1 %1400 }
 0xb60   :  { %3341 = vmatmul.mubr.msk.f32.vlgmr.msra.gmra.mrb[16].mxu1 %vm118_vm3, %v1401_v20 }
 0xb61   :  { %3603 = vmatpush3.bf16.msra.mxu0 %v4113_v12  ;;  %3606 = vmatpush3.bf16.msra.mxu1 %v4106_v9 }
 0xb62   :  { %3358 = vmatprep.mubr.msk.f32.mxu1 %vm3957_vm0, %v3958_v1  ;;  %3607 = vmatprep.subr.bf16.mxu1 %v3956_v0 }
 0xb63   :  { %3613 = vmatprep.subr.bf16.mxu0 %v3956_v0 }
 0xb64   :  { %3352 = vmatmul.mubr.msk.f32.vlgmr.msra.gmra.mrb[14].mxu0 %vm118_vm3, %v1401_v20  ;;  %3359 = vmatmul.mubr.msk.f32.vlgmr.msra.gmra.mrb[18].mxu1 %vm197_vm2, %v1571_v21 }
 0xb65   :  { %3609 = vmatpush3.bf16.msra.mxu1 %v4140_v35  ;;  %3615 = vmatpush3.bf16.msra.mxu0 %v4142_v39 }
 0xb66   :  { %3610 = vmatprep.subr.bf16.mxu1 %v3956_v0  ;;  %3369 = vmatprep.mubr.msk.f32.mxu1 %vm3957_vm0, %v3958_v1 }
 0xb67   :  { %3616 = vmatprep.subr.bf16.mxu0 %v3956_v0  ;;  %3380 = vmatprep.mubr.msk.f32.mxu0 %vm3957_vm0, %v3958_v1 }
 0xb69   :  { %3612 = vmatpush3.bf16.msra.mxu1 %v4145_v42  ;;  %3618 = vmatpush3.bf16.msra.mxu0 %v4149_v43 }
 0xb6a   :  { %3619 = vmatprep.subr.bf16.mxu1 %v3956_v0  ;;  %3625 = vmatprep.subr.bf16.mxu0 %v3956_v0 }
 0xc2f   :  { %v1395_v22 = vpop.f32.mrb[12].mxu0 }
 0xc30   :  { %v3331_v23 = vpop.f32.mrb[13].mxu0 }
 0xc33   :  { %v1470_v24 = vpop.f32.mrb[16].mxu1 }
 0xc34   :  { %v1471_v25 = vadd.f32 %v1470_v24, %v1395_v22  ;;  %v3342_v26 = vpop.f32.mrb[17].mxu1 }
 0xc36   :  { %v1474_v27 = vadd.f32 %v4190_v52, %v1471_v25 }
 0xc37   :  { %v1565_v28 = vpop.f32.mrb[14].mxu0  ;;  %v1640_v29 = vpop.f32.mrb[18].mxu1 }
 0xc38   :  { %3756 = vtanh.f32 %v1474_v27  ;;  %v3353_v30 = vpop.f32.mrb[15].mxu0  ;;  %v1641_v32 = vadd.f32 %v1640_v29, %v1565_v28  ;;  %v3360_v33 = vpop.f32.mrb[19].mxu1  ;;  %v3007_v37 = vmul.f32 -1.442695, %v1474_v27 }
 0xc3a   :  { %v1644_v31 = vadd.f32 %v4132_v17, %v1641_v32 }
 0xc3c   :  { %3758 = vtanh.f32 %v1644_v31  ;;  %v3010_v38 = vmul.f32 -1.442695, %v1644_v31 }
 0xc3d   :  { %3760 = vpow2.f32 %v3007_v37 }
 0xc3e   :  { %3762 = vpow2.f32 %v3010_v38 }
 0xc42   :  { %v3757_v34 = vpop.eup %3756 }
 0xc43   :  { %1484 = vrot.lane.b32.xlu0 %v3757_v34, %s3959_s24 }
 0xc46   :  { %v3759_v36 = vpop.eup %3758 }
 0xc47   :  { %1654 = vrot.lane.b32.xlu1 %v3759_v36, %s3959_s24  ;;  %v3761_v40 = vpop.eup %3760 }
 0xc48   :  { %v1478_v41 = vadd.f32 1.0, %v3761_v40  ;;  %v3763_v44 = vpop.eup %3762 }
 0xc49   :  { %v1648_v45 = vadd.f32 1.0, %v3763_v44 }
 0xc4a   :  { %3764 = vrcp.f32 %v1478_v41 }
 0xc4b   :  { %3766 = vrcp.f32 %v1648_v45 }
 0xc54   :  { %v3765_v46 = vpop.eup %3764 }
 0xc55   :  { %v3767_v49 = vpop.eup %3766  ;;  %v1482_v53 = vmul.f32 %v3765_v46, %v4292_v63 }
 0xc56   :  { %v1652_v56 = vmul.f32 %v3767_v49, %v4296_v4  ;;  %v1914_v4 = vrot.slane %v4108_v10, 5 }
 0xc58   :  { %v1916_v8 = vsel %vm195_vm1, %v1915_v6, %v1914_v4 }
 0xcb5   :  { %v1485_v47 = vpop.permute.xlu0 %1484 }
 0xcb6   :  { %v1487_v48 = vmul.f32 %v3765_v46, %v1485_v47 }
 0xcb8   :  { %1489 = vrot.lane.b32.xlu0 %v1487_v48, %s3960_s25 }
 0xcb9   :  { %v1655_v50 = vpop.permute.xlu1 %1654 }
 0xcba   :  { %v1657_v51 = vmul.f32 %v3767_v49, %v1655_v50 }
 0xcbc   :  { %1659 = vrot.lane.b32.xlu1 %v1657_v51, %s3960_s25 }
 0xd2a   :  { %v1490_v54 = vpop.permute.xlu0 %1489 }
 0xd2b   :  { %v4339_v55 = vadd.f32 %v1490_v54, %v1482_v53 }
 0xd2d   :  { %3768 = vtanh.f32 %v4339_v55 }
 0xd2e   :  { %v1660_v57 = vpop.permute.xlu1 %1659 }
 0xd2f   :  { %v4343_v58 = vadd.f32 %v1660_v57, %v1652_v56 }
 0xd31   :  { %3770 = vtanh.f32 %v4343_v58 }
 0xd37   :  { %v3769_v59 = vpop.eup %3768 }
 0xd38   :  { %1495 = vrot.lane.b32.xlu0 %v3769_v59, %s3959_s24  ;;  %v2260_v59 = vrot.slane %v4110_v11, 5 }
 0xd3b   :  { %v3771_v60 = vpop.eup %3770 }
 0xd3c   :  { %1665 = vrot.lane.b32.xlu1 %v3771_v60, %s3959_s24 }
 0xdaa   :  { %v1496_v61 = vpop.permute.xlu0 %1495 }
 0xdab   :  { %v1498_v62 = vmul.f32 %v3765_v46, %v1496_v61 }
 0xdad   :  { %1670 = vrot.lane.b32.xlu0 %v1498_v62, %s3960_s25 }
 0xdae   :  { %v1666_v63 = vpop.permute.xlu1 %1665 }
 0xdaf   :  { %v1668_v2 = vmul.f32 %v3767_v49, %v1666_v63 }
 0xdb1   :  { %1745 = vrot.lane.b32.xlu1 %v1668_v2, %s3960_s25 }
 0xe1f   :  { %v1671_v3 = vpop.permute.xlu0 %1670 }
 0xe20   :  { %3370 = vmatmul.mubr.msk.f32.vlgmr.msra.gmra.mrb[20].mxu1 %vm118_vm3, %v1671_v3 }
 0xe21   :  { %3621 = vmatpush3.bf16.msra.mxu1 %v4098_v5  ;;  %3391 = vmatprep.mubr.msk.f32.mxu1 %vm3957_vm0, %v3958_v1 }
 0xe22   :  { %3622 = vmatprep.subr.bf16.mxu1 %v3956_v0 }
 0xe23   :  { %v1746_v7 = vpop.permute.xlu1 %1745 }
 0xe24   :  { %3381 = vmatmul.mubr.msk.f32.vlgmr.msra.gmra.mrb[16].mxu0 %vm118_vm3, %v1746_v7 }
 0xe25   :  { %3624 = vmatpush3.bf16.msra.mxu1 %v4113_v12  ;;  %3627 = vmatpush3.bf16.msra.mxu0 %v4106_v9 }
 0xe26   :  { %3398 = vmatprep.mubr.msk.f32.mxu0 %vm3957_vm0, %v3958_v1  ;;  %3628 = vmatprep.subr.bf16.mxu0 %v3956_v0 }
 0xe27   :  { %3634 = vmatprep.subr.bf16.mxu1 %v3956_v0 }
 0xe28   :  { %3392 = vmatmul.mubr.msk.f32.vlgmr.msra.gmra.mrb[22].mxu1 %vm118_vm3, %v1746_v7  ;;  %3399 = vmatmul.mubr.msk.f32.vlgmr.msra.gmra.mrb[18].mxu0 %vm197_vm2, %v1916_v8 }
 0xe29   :  { %3630 = vmatpush3.bf16.msra.mxu0 %v4140_v35  ;;  %3636 = vmatpush3.bf16.msra.mxu1 %v4142_v39 }
 0xe2a   :  { %3631 = vmatprep.subr.bf16.mxu0 %v3956_v0  ;;  %3409 = vmatprep.mubr.msk.f32.mxu0 %vm3957_vm0, %v3958_v1 }
 0xe2b   :  { %3637 = vmatprep.subr.bf16.mxu1 %v3956_v0  ;;  %3420 = vmatprep.mubr.msk.f32.mxu1 %vm3957_vm0, %v3958_v1 }
 0xe2d   :  { %3633 = vmatpush3.bf16.msra.mxu0 %v4145_v42  ;;  %3639 = vmatpush3.bf16.msra.mxu1 %v4149_v43 }
 0xe2e   :  { %3640 = vmatprep.subr.bf16.mxu0 %v3956_v0  ;;  %3646 = vmatprep.subr.bf16.mxu1 %v3956_v0 }
 0xef3   :  { %v1740_v13 = vpop.f32.mrb[20].mxu1 }
 0xef4   :  { %v3371_v14 = vpop.f32.mrb[21].mxu1 }
 0xef7   :  { %v1815_v15 = vpop.f32.mrb[16].mxu0 }
 0xef8   :  { %v1816_v16 = vadd.f32 %v1815_v15, %v1740_v13  ;;  %v3382_v18 = vpop.f32.mrb[17].mxu0 }
 0xefa   :  { %v1819_v19 = vadd.f32 %v4190_v52, %v1816_v16 }
 0xefb   :  { %v1910_v20 = vpop.f32.mrb[22].mxu1  ;;  %v1985_v21 = vpop.f32.mrb[18].mxu0 }
 0xefc   :  { %3772 = vtanh.f32 %v1819_v19  ;;  %v3393_v22 = vpop.f32.mrb[23].mxu1  ;;  %v1986_v23 = vadd.f32 %v1985_v21, %v1910_v20  ;;  %v3400_v24 = vpop.f32.mrb[19].mxu0  ;;  %v3013_v28 = vmul.f32 -1.442695, %v1819_v19 }
 0xefe   :  { %v1989_v25 = vadd.f32 %v4132_v17, %v1986_v23 }
 0xf00   :  { %3774 = vtanh.f32 %v1989_v25  ;;  %v3016_v29 = vmul.f32 -1.442695, %v1989_v25 }
 0xf01   :  { %3776 = vpow2.f32 %v3013_v28 }
 0xf02   :  { %3778 = vpow2.f32 %v3016_v29 }
 0xf06   :  { %v3773_v26 = vpop.eup %3772 }
 0xf07   :  { %1829 = vrot.lane.b32.xlu0 %v3773_v26, %s3959_s24 }
 0xf0a   :  { %v3775_v27 = vpop.eup %3774 }
 0xf0b   :  { %1999 = vrot.lane.b32.xlu1 %v3775_v27, %s3959_s24  ;;  %v3777_v30 = vpop.eup %3776 }
 0xf0c   :  { %v1823_v32 = vadd.f32 1.0, %v3777_v30  ;;  %v3779_v33 = vpop.eup %3778 }
 0xf0d   :  { %v1993_v31 = vadd.f32 1.0, %v3779_v33 }
 0xf0e   :  { %3780 = vrcp.f32 %v1823_v32 }
 0xf0f   :  { %3782 = vrcp.f32 %v1993_v31 }
 0xf18   :  { %v3781_v34 = vpop.eup %3780 }
 0xf19   :  { %v3783_v38 = vpop.eup %3782  ;;  %v1827_v44 = vmul.f32 %v3781_v34, %v4339_v55 }
 0xf1a   :  { %v1997_v47 = vmul.f32 %v3783_v38, %v4343_v58  ;;  %v2259_v58 = vrot.slane %v4108_v10, 6 }
 0xf1c   :  { %v2261_v61 = vsel %vm195_vm1, %v2260_v59, %v2259_v58 }
 0xf79   :  { %v1830_v36 = vpop.permute.xlu0 %1829 }
 0xf7a   :  { %v1832_v37 = vmul.f32 %v3781_v34, %v1830_v36 }
 0xf7c   :  { %1834 = vrot.lane.b32.xlu0 %v1832_v37, %s3960_s25 }
 0xf7d   :  { %v2000_v40 = vpop.permute.xlu1 %1999 }
 0xf7e   :  { %v2002_v41 = vmul.f32 %v3783_v38, %v2000_v40 }
 0xf80   :  { %2004 = vrot.lane.b32.xlu1 %v2002_v41, %s3960_s25 }
 0xfee   :  { %v1835_v45 = vpop.permute.xlu0 %1834 }
 0xfef   :  { %v4386_v46 = vadd.f32 %v1835_v45, %v1827_v44 }
 0xff1   :  { %3784 = vtanh.f32 %v4386_v46 }
 0xff2   :  { %v2005_v48 = vpop.permute.xlu1 %2004 }
 0xff3   :  { %v4390_v49 = vadd.f32 %v2005_v48, %v1997_v47  ;;  %v3829_v48 = vld [vmem:[#allocation2 + $0x8] sm:$0xff] }
 0xff5   :  { %3786 = vtanh.f32 %v4390_v49 }
 0xffb   :  { %v3785_v50 = vpop.eup %3784 }
 0xffc   :  { %1840 = vrot.lane.b32.xlu0 %v3785_v50, %s3959_s24 }
 0xfff   :  { %v3787_v51 = vpop.eup %3786 }
0x1000   :  { %2010 = vrot.lane.b32.xlu1 %v3787_v51, %s3959_s24 }
0x106e   :  { %v1841_v53 = vpop.permute.xlu0 %1840 }
0x106f   :  { %v1843_v54 = vmul.f32 %v3781_v34, %v1841_v53 }
0x1071   :  { %2015 = vrot.lane.b32.xlu0 %v1843_v54, %s3960_s25 }
0x1072   :  { %v2011_v55 = vpop.permute.xlu1 %2010 }
0x1073   :  { %v2013_v56 = vmul.f32 %v3783_v38, %v2011_v55 }
0x1075   :  { %2090 = vrot.lane.b32.xlu1 %v2013_v56, %s3960_s25 }
0x10e3   :  { %v2016_v57 = vpop.permute.xlu0 %2015 }
0x10e4   :  { %3410 = vmatmul.mubr.msk.f32.vlgmr.msra.gmra.mrb[20].mxu0 %vm118_vm3, %v2016_v57 }
0x10e5   :  { %3642 = vmatpush3.bf16.msra.mxu0 %v4098_v5  ;;  %3431 = vmatprep.mubr.msk.f32.mxu0 %vm3957_vm0, %v3958_v1 }
0x10e6   :  { %3643 = vmatprep.subr.bf16.mxu0 %v3956_v0 }
0x10e7   :  { %v2091_v60 = vpop.permute.xlu1 %2090 }
0x10e8   :  { %3421 = vmatmul.mubr.msk.f32.vlgmr.msra.gmra.mrb[24].mxu1 %vm118_vm3, %v2091_v60 }
0x10e9   :  { %3645 = vmatpush3.bf16.msra.mxu0 %v4113_v12  ;;  %3648 = vmatpush3.bf16.msra.mxu1 %v4106_v9 }
0x10ea   :  { %3438 = vmatprep.mubr.msk.f32.mxu1 %vm3957_vm0, %v3958_v1  ;;  %3649 = vmatprep.subr.bf16.mxu1 %v3956_v0 }
0x10eb   :  { %3655 = vmatprep.subr.bf16.mxu0 %v3956_v0 }
0x10ec   :  { %3432 = vmatmul.mubr.msk.f32.vlgmr.msra.gmra.mrb[22].mxu0 %vm118_vm3, %v2091_v60  ;;  %3439 = vmatmul.mubr.msk.f32.vlgmr.msra.gmra.mrb[26].mxu1 %vm197_vm2, %v2261_v61 }
0x10ed   :  { %3651 = vmatpush3.bf16.msra.mxu1 %v4140_v35  ;;  %3657 = vmatpush3.bf16.msra.mxu0 %v4142_v39 }
0x10ee   :  { %3652 = vmatprep.subr.bf16.mxu1 %v3956_v0  ;;  %3449 = vmatprep.mubr.msk.f32.mxu1 %vm3957_vm0, %v3958_v1 }
0x10ef   :  { %3658 = vmatprep.subr.bf16.mxu0 %v3956_v0  ;;  %3460 = vmatprep.mubr.msk.f32.mxu0 %vm3957_vm0, %v3958_v1 }
0x10f1   :  { %3654 = vmatpush3.bf16.msra.mxu1 %v4145_v42  ;;  %3660 = vmatpush3.bf16.msra.mxu0 %v4149_v43 }
0x10f2   :  { %3661 = vmatprep.subr.bf16.mxu1 %v3956_v0  ;;  %3667 = vmatprep.subr.bf16.mxu0 %v3956_v0 }
0x11b7   :  { %v2085_v10 = vpop.f32.mrb[20].mxu0 }
0x11b8   :  { %v3411_v11 = vpop.f32.mrb[21].mxu0 }
0x11bb   :  { %v2160_v62 = vpop.f32.mrb[24].mxu1 }
0x11bc   :  { %v2161_v63 = vadd.f32 %v2160_v62, %v2085_v10  ;;  %v3422_v2 = vpop.f32.mrb[25].mxu1 }
0x11be   :  { %v2164_v3 = vadd.f32 %v4190_v52, %v2161_v63 }
0x11bf   :  { %v2255_v4 = vpop.f32.mrb[22].mxu0  ;;  %v2330_v6 = vpop.f32.mrb[26].mxu1 }
0x11c0   :  { %3788 = vtanh.f32 %v2164_v3  ;;  %v3433_v7 = vpop.f32.mrb[23].mxu0  ;;  %v2331_v8 = vadd.f32 %v2330_v6, %v2255_v4  ;;  %v3440_v13 = vpop.f32.mrb[27].mxu1  ;;  %v3019_v18 = vmul.f32 -1.442695, %v2164_v3 }
0x11c2   :  { %v2334_v14 = vadd.f32 %v4132_v17, %v2331_v8 }
0x11c4   :  { %3790 = vtanh.f32 %v2334_v14  ;;  %v3022_v19 = vmul.f32 -1.442695, %v2334_v14 }
0x11c5   :  { %3792 = vpow2.f32 %v3019_v18 }
0x11c6   :  { %3794 = vpow2.f32 %v3022_v19 }
0x11ca   :  { %v3789_v15 = vpop.eup %3788 }
0x11cb   :  { %2174 = vrot.lane.b32.xlu0 %v3789_v15, %s3959_s24 }
0x11ce   :  { %v3791_v16 = vpop.eup %3790 }
0x11cf   :  { %2344 = vrot.lane.b32.xlu1 %v3791_v16, %s3959_s24  ;;  %v3793_v20 = vpop.eup %3792 }
0x11d0   :  { %v2168_v21 = vadd.f32 1.0, %v3793_v20  ;;  %v3795_v22 = vpop.eup %3794 }
0x11d1   :  { %v2338_v23 = vadd.f32 1.0, %v3795_v22 }
0x11d2   :  { %3796 = vrcp.f32 %v2168_v21 }
0x11d3   :  { %3798 = vrcp.f32 %v2338_v23 }
0x11dc   :  { %v3797_v24 = vpop.eup %3796 }
0x11dd   :  { %v3799_v26 = vpop.eup %3798  ;;  %v2172_v29 = vmul.f32 %v3797_v24, %v4386_v46  ;;  %v3828_v46 = vld [vmem:[#allocation2] sm:$0xff] }
0x11de   :  { %v2342_v33 = vmul.f32 %v3799_v26, %v4390_v49  ;;  %v2604_v47 = vrot.slane %v3828_v46, 7  ;;  %v2605_v49 = vrot.slane %v3829_v48, 6  ;;  %v2880_v48 = vld [vmem:[%s4531_s7 + $0x8] sm:$0xff] }
0x11e0   :  { %v2606_v51 = vsel %vm195_vm1, %v2605_v49, %v2604_v47  ;;  %v2879_v47 = vld [vmem:[%s4531_s7] sm:$0xff]  ;;  %v2881_v49 = vld [vmem:[%s4531_s7 + $0x10] sm:$0xff] }
0x123d   :  { %v2175_v25 = vpop.permute.xlu0 %2174 }
0x123e   :  { %v2177_v17 = vmul.f32 %v3797_v24, %v2175_v25 }
0x1240   :  { %2179 = vrot.lane.b32.xlu0 %v2177_v17, %s3960_s25 }
0x1241   :  { %v2345_v27 = vpop.permute.xlu1 %2344 }
0x1242   :  { %v2347_v28 = vmul.f32 %v3799_v26, %v2345_v27 }
0x1244   :  { %2349 = vrot.lane.b32.xlu1 %v2347_v28, %s3960_s25 }
0x12b2   :  { %v2180_v30 = vpop.permute.xlu0 %2179 }
0x12b3   :  { %v4433_v32 = vadd.f32 %v2180_v30, %v2172_v29 }
0x12b5   :  { %3800 = vtanh.f32 %v4433_v32 }
0x12b6   :  { %v2350_v31 = vpop.permute.xlu1 %2349 }
0x12b7   :  { %v4437_v34 = vadd.f32 %v2350_v31, %v2342_v33  ;;  %v3831_v33 = vld [vmem:[%s4530_s6] ss:$0 sm:$0xff] }
0x12b9   :  { %3802 = vtanh.f32 %v4437_v34 }
0x12bf   :  { %v3801_v36 = vpop.eup %3800 }
0x12c0   :  { %2185 = vrot.lane.b32.xlu0 %v3801_v36, %s3959_s24 }
0x12c3   :  { %v3803_v37 = vpop.eup %3802 }
0x12c4   :  { %2355 = vrot.lane.b32.xlu1 %v3803_v37, %s3959_s24 }
0x1332   :  { %v2186_v38 = vpop.permute.xlu0 %2185 }
0x1333   :  { %v2188_v40 = vmul.f32 %v3797_v24, %v2186_v38 }
0x1335   :  { %2360 = vrot.lane.b32.xlu0 %v2188_v40, %s3960_s25 }
0x1336   :  { %v2356_v41 = vpop.permute.xlu1 %2355 }
0x1337   :  { %v2358_v44 = vmul.f32 %v3799_v26, %v2356_v41 }
0x1339   :  { %2435 = vrot.lane.b32.xlu1 %v2358_v44, %s3960_s25 }
0x13a7   :  { %v2361_v45 = vpop.permute.xlu0 %2360 }
0x13a8   :  { %3450 = vmatmul.mubr.msk.f32.vlgmr.msra.gmra.mrb[28].mxu1 %vm118_vm3, %v2361_v45 }
0x13a9   :  { %3663 = vmatpush3.bf16.msra.mxu1 %v4098_v5  ;;  %3471 = vmatprep.mubr.msk.f32.mxu1 %vm3957_vm0, %v3958_v1 }
0x13aa   :  { %3664 = vmatprep.subr.bf16.mxu1 %v3956_v0 }
0x13ab   :  { %v2436_v50 = vpop.permute.xlu1 %2435 }
0x13ac   :  { %3461 = vmatmul.mubr.msk.f32.vlgmr.msra.gmra.mrb[24].mxu0 %vm118_vm3, %v2436_v50 }
0x13ad   :  { %3666 = vmatpush3.bf16.msra.mxu1 %v4113_v12  ;;  %3669 = vmatpush3.bf16.msra.mxu0 %v4106_v9 }
0x13ae   :  { %3478 = vmatprep.mubr.msk.f32.mxu0 %vm3957_vm0, %v3958_v1  ;;  %3670 = vmatprep.subr.bf16.mxu0 %v3956_v0 }
0x13af   :  { %3676 = vmatprep.subr.bf16.mxu1 %v3956_v0 }
0x13b0   :  { %3472 = vmatmul.mubr.msk.f32.vlgmr.msra.gmra.mrb[30].mxu1 %vm118_vm3, %v2436_v50  ;;  %3479 = vmatmul.mubr.msk.f32.vlgmr.msra.gmra.mrb[26].mxu0 %vm197_vm2, %v2606_v51  ;;  %v3683_v50 = vpack.c.bf16 %v2880_v48, %v2879_v47  ;;  %v2882_v51 = vld [vmem:[%s4531_s7 + $0x18] sm:$0xff]  ;;  %s3961_s7 = smov [#allocation10]  }
0x13b1   :  { %3672 = vmatpush3.bf16.msra.mxu0 %v4140_v35  ;;  %3678 = vmatpush3.bf16.msra.mxu1 %v4142_v39  ;;  %s2973_s5 = sshll.u32 %s3961_s7, 4  ;;  %s2974_s5 = int_to_ptr.vmem [resolvable:$true] %s2973_s5 }
0x13b2   :  { %3673 = vmatprep.subr.bf16.mxu0 %v3956_v0  ;;  %3489 = vmatprep.mubr.msk.f32.mxu0 %vm3957_vm0, %v3958_v1  ;;  %s3920_s21 = scalar_lea.vmem %s2974_s5, 32  ;;  %p3925_p5 = scmp.lt.s32.totalorder %s2974_s5, %s2974_s5 }
0x13b3   :  { %3679 = vmatprep.subr.bf16.mxu1 %v3956_v0  ;;  %3500 = vmatprep.mubr.msk.f32.mxu1 %vm3957_vm0, %v3958_v1  ;;  %p3921_p4 = scmp.ne.s32.totalorder %s2974_s5, %s3920_s21  ;;  %p3926_p6 = scmp.lt.s32.totalorder %s3920_s21, %s3920_s21 }
0x13b5   :  { %3675 = vmatpush3.bf16.msra.mxu0 %v4145_v42  ;;  %3681 = vmatpush3.bf16.msra.mxu1 %v4149_v43  ;;  %v3830_v42 = vld [vmem:[%s4527_s3] ss:$0 sm:$0xff]  ;;  %p3927_p7 = por %p3926_p6, %p3925_p5 }
0x13b6   :  { %3682 = vmatprep.subr.bf16.mxu0 %v3956_v0 }
0x13b7   :  { %p3928_p8 = pnand %p3927_p7, %p3921_p4 }
0x147b   :  { %v2430_v5 = vpop.f32.mrb[28].mxu1 }
0x147c   :  { %v3451_v9 = vpop.f32.mrb[29].mxu1 }
0x147f   :  { %v2505_v12 = vpop.f32.mrb[24].mxu0 }
0x1480   :  { %v2506_v35 = vadd.f32 %v2505_v12, %v2430_v5  ;;  %v3462_v39 = vpop.f32.mrb[25].mxu0  ;;  %v3686_v5 = vpack.c.bf16 %v2882_v51, %v2881_v49 }
0x1482   :  { %v2509_v53 = vadd.f32 %v4190_v52, %v2506_v35 }
0x1483   :  { %v2600_v54 = vpop.f32.mrb[30].mxu1  ;;  %v2675_v55 = vpop.f32.mrb[26].mxu0 }
0x1484   :  { %3804 = vtanh.f32 %v2509_v53  ;;  %v3473_v56 = vpop.f32.mrb[31].mxu1  ;;  %v2676_v57 = vadd.f32 %v2675_v55, %v2600_v54  ;;  %v3480_v58 = vpop.f32.mrb[27].mxu0  ;;  %v3025_v61 = vmul.f32 -1.442695, %v2509_v53  ;;  %v3032_v53 = vld [vmem:[%s4532_s8] ss:$0 sm:$0xff] }
0x1486   :  { %v2679_v43 = vadd.f32 %v3830_v42, %v2676_v57 }
0x1488   :  { %3806 = vtanh.f32 %v2679_v43  ;;  %v3028_v52 = vmul.f32 -1.442695, %v2679_v43 }
0x1489   :  { %3808 = vpow2.f32 %v3025_v61 }
0x148a   :  { %3810 = vpow2.f32 %v3028_v52 }
0x148e   :  { %v3805_v59 = vpop.eup %3804 }
0x148f   :  { %2519 = vrot.lane.b32.xlu0 %v3805_v59, %s3959_s24 }
0x1492   :  { %v3807_v60 = vpop.eup %3806 }
0x1493   :  { %2689 = vrot.lane.b32.xlu1 %v3807_v60, %s3959_s24  ;;  %v3809_v10 = vpop.eup %3808 }
0x1494   :  { %v2513_v11 = vadd.f32 1.0, %v3809_v10  ;;  %v3811_v62 = vpop.eup %3810 }
0x1495   :  { %v2683_v63 = vadd.f32 1.0, %v3811_v62 }
0x1496   :  { %3812 = vrcp.f32 %v2513_v11 }
0x1497   :  { %3814 = vrcp.f32 %v2683_v63 }
0x14a0   :  { %v3813_v2 = vpop.eup %3812 }
0x14a1   :  { %v3815_v6 = vpop.eup %3814  ;;  %v2517_v13 = vmul.f32 %v3813_v2, %v4433_v32 }
0x14a2   :  { %v2687_v16 = vmul.f32 %v3815_v6, %v4437_v34 }
0x1501   :  { %v2520_v3 = vpop.permute.xlu0 %2519 }
0x1502   :  { %v2522_v4 = vmul.f32 %v3813_v2, %v2520_v3 }
0x1504   :  { %2524 = vrot.lane.b32.xlu0 %v2522_v4, %s3960_s25 }
0x1505   :  { %v2690_v7 = vpop.permute.xlu1 %2689 }
0x1506   :  { %v2692_v8 = vmul.f32 %v3815_v6, %v2690_v7 }
0x1508   :  { %2694 = vrot.lane.b32.xlu1 %v2692_v8, %s3960_s25 }
0x1576   :  { %v2525_v14 = vpop.permute.xlu0 %2524 }
0x1577   :  { %v2527_v15 = vadd.f32 %v2525_v14, %v2517_v13 }
0x1579   :  { %3816 = vtanh.f32 %v2527_v15 }
0x157a   :  { %v2695_v18 = vpop.permute.xlu1 %2694 }
0x157b   :  { %v2697_v19 = vadd.f32 %v2695_v18, %v2687_v16 }
0x157d   :  { %3818 = vtanh.f32 %v2697_v19 }
0x1583   :  { %v3817_v20 = vpop.eup %3816 }
0x1584   :  { %2530 = vrot.lane.b32.xlu0 %v3817_v20, %s3959_s24 }
0x1587   :  { %v3819_v21 = vpop.eup %3818 }
0x1588   :  { %2700 = vrot.lane.b32.xlu1 %v3819_v21, %s3959_s24 }
0x15f6   :  { %v2531_v22 = vpop.permute.xlu0 %2530 }
0x15f7   :  { %v2533_v23 = vmul.f32 %v3813_v2, %v2531_v22 }
0x15f9   :  { %2705 = vrot.lane.b32.xlu0 %v2533_v23, %s3960_s25 }
0x15fa   :  { %v2701_v24 = vpop.permute.xlu1 %2700 }
0x15fb   :  { %v2703_v25 = vmul.f32 %v3815_v6, %v2701_v24 }
0x15fd   :  { %2780 = vrot.lane.b32.xlu1 %v2703_v25, %s3960_s25 }
0x166b   :  { %v2706_v17 = vpop.permute.xlu0 %2705 }
0x166c   :  { %3490 = vmatmul.mubr.msk.f32.vlgmr.msra.gmra.mrb[28].mxu0 %vm118_vm3, %v2706_v17 }
0x166d   :  { %3511 = vmatprep.mubr.msk.f32.mxu0 %vm3957_vm0, %v3958_v1  ;;  %3684 = vmatpush3.bf16.msra.mxu0 %v3683_v50 }
0x166e   :  { %3685 = vmatprep.subr.bf16.mxu0 %v3956_v0 }
0x166f   :  { %v2781_v26 = vpop.permute.xlu1 %2780 }
0x1670   :  { %3501 = vmatmul.mubr.msk.f32.vlgmr.msra.gmra.mrb[32].mxu1 %vm118_vm3, %v2781_v26 }
0x1671   :  { %3687 = vmatpush3.bf16.msra.mxu0 %v3686_v5 }
0x173f   :  { %v2775_v27 = vpop.f32.mrb[28].mxu0 }
0x1740   :  { %v3491_v28 = vpop.f32.mrb[29].mxu0 }
0x1743   :  { %v2850_v29 = vpop.f32.mrb[32].mxu1 }
0x1744   :  { %v2851_v30 = vadd.f32 %v2850_v29, %v2775_v27  ;;  %v3502_v32 = vpop.f32.mrb[33].mxu1 }
0x1746   :  { %v2854_v31 = vadd.f32 %v3831_v33, %v2851_v30 }
0x1748   :  { %3820 = vtanh.f32 %v2854_v31  ;;  %v3031_v36 = vmul.f32 -1.442695, %v2854_v31 }
0x174a   :  { %3822 = vpow2.f32 %v3031_v36 }
0x1752   :  { %v3821_v34 = vpop.eup %3820 }
0x1753   :  { %2864 = vrot.lane.b32.xlu0 %v3821_v34, %s3959_s24 }
0x1754   :  { %v3823_v1 = vpop.eup %3822 }
0x1755   :  { %v2858_v37 = vadd.f32 1.0, %v3823_v1 }
0x1757   :  { %3824 = vrcp.f32 %v2858_v37 }
0x1761   :  { %v3825_v38 = vpop.eup %3824 }
0x1762   :  { %v2862_v44 = vmul.f32 %v3825_v38, %v2527_v15 }
0x17c5   :  { %v2865_v40 = vpop.permute.xlu0 %2864 }
0x17c6   :  { %v2867_v41 = vmul.f32 %v3825_v38, %v2865_v40 }
0x17c8   :  { %2869 = vrot.lane.b32.xlu1 %v2867_v41, %s3960_s25 }
0x183a   :  { %v2870_v45 = vpop.permute.xlu1 %2869 }
0x183b   :  { %v2872_v46 = vadd.f32 %v2870_v45, %v2862_v44 }
0x183d   :  { %3826 = vtanh.f32 %v2872_v46 }
0x1847   :  { %v3827_v9 = vpop.eup %3826 }
0x1848   :  { %2875 = vrot.lane.b32.xlu0 %v3827_v9, %s3959_s24 }
0x18ba   :  { %v2876_v12 = vpop.permute.xlu0 %2875 }
0x18bb   :  { %v2878_v35 = vmul.f32 %v3825_v38, %v2876_v12 }
0x18bd   :  { %2891 = vrot.lane.b32.xlu1 %v2878_v35, %s3960_s25 }
0x192f   :  { %v2892_v39 = vpop.permute.xlu1 %2891 }
0x1930   :  { %3512 = vmatmul.mubr.msk.f32.vlgmr.msra.gmra.mrb[30].mxu0 %vm118_vm3, %v2892_v39 }
0x1a03   :  { %v2961_v54 = vpop.f32.mrb[30].mxu0 }
0x1a04   :  { %v2962_v0 = vadd.f32 %v3032_v53, %v2961_v54  ;;  %v3513_v55 = vpop.f32.mrb[31].mxu0 }
0x1a06   :  { %2966 = vst.msk [vmem:[#allocation10] sm:$0x3] %vm2965_vm4, %v2962_v0 }
0x1a07   :  { %3931 = shalt.err (!%p3928_p8)
}
0x1a08   :  { %s3932_s17 = scalar_lea.hbm %s4533_s9, 32 }
0x1a09   :  { %p3933_p9 = scmp.ne.s32.totalorder %s4533_s9, %s3932_s17  ;;  %p3936_p10 = scmp.lt.u32.totalorder %s3932_s17, %s4533_s9 }
0x1a0b   :  { %p3938_p11 = pnand %p3936_p10, %p3933_p9 }
0x1a0d   :  { %3941 = shalt.err (!%p3938_p11)
}
0x1a0e   :  { %2976 = dma.vmem_to_hbm [thread:$0]  %s2974_s5, 32, %s4533_s9, [#allocation4]  }
0x1a0f   :  { %3948 = dma.done.wait [#allocation4], 32  }
0x1a10   :  { %3949 = vsyncadd [#allocation4], 4294967264 }
0x1a11   :  { %2980 = vsyncpa [#allocation3], 1 }
0x1a12   :  { %2981 = vsyncpa [#allocation6], 1 }
0x1a13   :  { %2982 = vsyncpa [#allocation9], 1 }
0x1a14   :  { %2983 = vsyncpa [#allocation4], 1 }

</bundles_post_ra>
